<compile_context>
chip_gen: v7x
topology: tpu7x:2x2x1
jax: 0.10.0
libtpu: 0.0.40
codegen_flags: <defaults>
</compile_context>

<pallas_src>
import functools
import numpy as np
import jax
import jax.numpy as jnp
from jax import lax
from jax.experimental import pallas as pl
from jax.experimental.pallas import tpu as pltpu

# ---------------- model hyper-parameters (matching the torch module) ----------
KIND_NAME = "H"
PRIM_BASIS_SIZE = 5            # 2x0e + 1x1o
PAO_BASIS_SIZE = 4
FEATURE_KINDS = ["H", "O"]     # features_irreps = 2x0e
NUM_FEATURES = len(FEATURE_KINDS)
NUM_NEIGHBORS = 8
NUM_DISTANCES = 16
NUM_LAYERS = 32                # hidden width of the FullyConnectedNet
CUTOFF = 6.0
NUM_PATHS = 7                  # valid TP paths
WEIGHT_NUMEL = 14              # 7 TP paths x (mul1=2, mul2=1, mul_out=1)
VEC_DIM = 18                   # SymmetricMatrix.input_irreps dim
VEC_REDUCED = 15               # non-zero slots (the 1e block has no TP path)
MAT_FLAT = PRIM_BASIS_SIZE * PRIM_BASIS_SIZE  # 25
PACK_WIDTH = 8                 # 3 relpos + 2 features + 3 pad (sublanes)
LANE = 128


# ---------------- constant tensors (wigner blocks, basis rotation) -------------
def _build_symmetric_matrix_map():
    """Linear map T (18, 25): h_aux_vec -> flattened lower-block contributions."""
    s3 = np.sqrt(3.0)
    ex, ey, ez = np.eye(3, dtype=np.float64)
    w000 = np.ones((1, 1, 1))
    w101 = np.zeros((3, 1, 3))
    for p in range(3):
        w101[p, 0, p] = 1.0 / s3
    w110 = np.zeros((3, 3, 1))
    for p in range(3):
        w110[p, p, 0] = 1.0 / s3
    eps = np.zeros((3, 3, 3))
    eps[0, 1, 2] = eps[1, 2, 0] = eps[2, 0, 1] = 1.0
    eps[0, 2, 1] = eps[2, 1, 0] = eps[1, 0, 2] = -1.0
    w111 = eps / np.sqrt(6.0)   # couples to the identically-zero 1e coefficients
    # l=1 x l=1 -> l=2, component order matching e3nn spherical-harmonic order
    M = np.zeros((5, 3, 3))
    M[0] = (s3 / 2) * (np.outer(ex, ez) + np.outer(ez, ex))      # ~ x*z
    M[1] = (s3 / 2) * (np.outer(ex, ey) + np.outer(ey, ex))      # ~ x*y
    M[2] = np.diag([-0.5, 1.0, -0.5])                            # ~ y^2 - (x^2+z^2)/2
    M[3] = (s3 / 2) * (np.outer(ey, ez) + np.outer(ez, ey))      # ~ y*z
    M[4] = (s3 / 2) * (np.outer(ez, ez) - np.outer(ex, ex))      # ~ (z^2-x^2)/2
    w112 = np.transpose(M, (1, 2, 0)) / np.sqrt(7.5)             # unit Frobenius norm
    # TODO(synk): w111/w112 match e3nn.o3.wigner_3j up to a possible global sign convention.

    # blocks in SymmetricMatrix loop order for basis ls = [0, 0, 1]
    blocks = [
        (0, 0, w000), (1, 0, w000), (1, 1, w000),
        (2, 0, w101), (2, 1, w101),
        (2, 2, w110), (2, 2, w111), (2, 2, w112),
    ]
    T = np.zeros((VEC_DIM, MAT_FLAT))
    c = 0
    for a, b, W in blocks:
        di, dj, dk = W.shape
        for p in range(di):
            for q in range(dj):
                for k in range(dk):
                    T[c + k, PRIM_BASIS_SIZE * (a + p) + (b + q)] += W[p, q, k]
        c += dk
    assert c == VEC_DIM
    return T.astype(np.float32)


def _build_D_yzx_to_xyz():
    """prim_basis_irreps.D_from_matrix(yzx_to_xyz): blockdiag(1, 1, R) since
    e3nn's l=1 Wigner D of a proper rotation is the rotation matrix itself."""
    R = np.array([[0.0, 0.0, 1.0], [1.0, 0.0, 0.0], [0.0, 1.0, 0.0]])
    D = np.zeros((PRIM_BASIS_SIZE, PRIM_BASIS_SIZE))
    D[0, 0] = 1.0
    D[1, 1] = 1.0
    D[2:5, 2:5] = R
    return D.astype(np.float32)


def _sigmoid_2mom_cst():
    """e3nn.math.normalize2mom(torch.sigmoid) constant = 1/sqrt(E[sigmoid(z)^2]),
    z ~ N(0,1), computed via Gauss-Hermite quadrature (e3nn uses Monte-Carlo)."""
    nodes, w = np.polynomial.hermite.hermgauss(100)
    z = np.sqrt(2.0) * nodes
    sig = 1.0 / (1.0 + np.exp(-z))
    m2 = np.sum(w * sig ** 2) / np.sqrt(np.pi)
    return float(m2 ** -0.5)


# reorder w1 columns from [f0,f1 interleaved per path] to [7 f0-cols | 7 f1-cols]
_W1_PERM = np.concatenate([np.arange(0, WEIGHT_NUMEL, 2),
                           np.arange(1, WEIGHT_NUMEL, 2)])

# vec rows emitted by the kernel, in kernel order -> original irrep-slot order.
# Kernel order: [4x 0e slots (paths 0..3), 1o#1, 1o#2, 2e]; slots 10..12 (1e)
# have no TP path and are dropped.
_VEC_ORDER = [0, 1, 2, 9, 3, 4, 5, 6, 7, 8, 13, 14, 15, 16, 17]
_T_NP = _build_symmetric_matrix_map()                               # (18, 25)
_TT_AUG_NP = np.concatenate(
    [_T_NP[_VEC_ORDER, :].T,
     np.eye(PRIM_BASIS_SIZE, dtype=np.float32).reshape(MAT_FLAT, 1)],
    axis=1).astype(np.float32)                                      # (25, 16)


# ---------------- Pallas kernel: fused per-neighbor pipeline -------------------
def _pao_kernel(x_ref, w0t_ref, w1t_ref, tt_ref, out_ref, *,
                tile_atoms, num_neighbors, num_distances, inv_bucket_width):
    # x: (8, R) with R = num_neighbors * tile_atoms lanes (neighbor-outer).
    # Sublanes: [rx, ry, rz, f0, f1, pad, pad, pad].
    x = x_ref[...]
    rows = x.shape[-1]

    rel = x[0:3, :]                                   # (3, R)
    f0 = x[3:4, :]                                    # (1, R)
    f1 = x[4:5, :]

    # distance + unit direction via one EUP rsqrt (no sqrt / divide)
    sq = rel * rel
    d2 = sq[0:1, :] + sq[1:2, :] + sq[2:3, :]         # (1, R)
    inv_d = lax.rsqrt(jnp.maximum(d2, 1e-24))
    d = d2 * inv_d                                    # |r|
    u = rel * inv_d                                   # (3, R)
    # TODO(synk): zero-length/padded neighbors rely on zero features to cancel;
    # add an explicit neighbor mask if upstream ever pads with nonzero features.

    # gaussian distance embedding; bucket k sits at k*bucket_width, so the
    # bucket table is just a sublane iota.  The 1/1.12 factor is folded into w0.
    k_idx = lax.broadcasted_iota(jnp.int32, (num_distances, rows), 0).astype(jnp.float32)
    diff = d * inv_bucket_width - k_idx               # (16, R)
    emb = jnp.exp(-(diff * diff))

    # 2-layer e3nn FullyConnectedNet.  The input *sqrt(Dd) and the first-layer
    # /sqrt(Dd) cancel; act_cst, /sqrt(H) and the TP sqrt(0.5) path norm are
    # folded into w1 host-side.  sigmoid(x) = 0.5 + 0.5*tanh(x/2): one EUP push.
    h = jnp.dot(w0t_ref[...], emb, preferred_element_type=jnp.float32)    # (32, R)
    sig = 0.5 + 0.5 * jnp.tanh(0.5 * h)
    wts = jnp.dot(w1t_ref[...], sig, preferred_element_type=jnp.float32)  # (14, R)

    # FullyConnectedTensorProduct(2x0e, 0e+1o+2e -> input_irreps): per-path
    # scalar coefficients (feature sqrt(N) and the final /sqrt(N) cancel).
    pathmat = wts[0:NUM_PATHS, :] * f0 + wts[NUM_PATHS:2 * NUM_PATHS, :] * f1  # (7, R)

    # spherical harmonics lmax=2 (normalize=True, normalization='component')
    s3 = 3.0 ** 0.5
    s5 = 5.0 ** 0.5
    s15 = s3 * s5
    ux = u[0:1, :]
    uy = u[1:2, :]
    uz = u[2:3, :]
    sh1 = s3 * u                                                          # (3, R)
    sh2 = jnp.concatenate([
        s15 * ux * uz,
        s15 * ux * uy,
        s5 * (uy * uy - 0.5 * (ux * ux + uz * uz)),
        s15 * uy * uz,
        (0.5 * s15) * (uz * uz - ux * ux)], axis=0)                       # (5, R)

    # assemble the 15 non-zero output-irrep rows directly (sh l=0 component = 1);
    # the 1e slots (no TP path) are dropped together with their rows of T.
    vec = jnp.concatenate([
        pathmat[0:4, :],                 # four 0e slots
        pathmat[4:5, :] * sh1,           # 1o #1
        pathmat[5:6, :] * sh1,           # 1o #2
        pathmat[6:7, :] * sh2,           # 2e
    ], axis=0)                           # (15, R)

    # neighbor reduction: lane-dense slab adds (columns are neighbor-outer,
    # tile_atoms is a multiple of 128 so every slab is 128-lane aligned).
    h_aux = vec[:, 0:tile_atoms]
    for n in range(1, num_neighbors):
        h_aux = h_aux + vec[:, n * tile_atoms:(n + 1) * tile_atoms]       # (15, ta)

    # SymmetricMatrix: flattened 5x5.  The identity is folded into the last
    # column of tt (25, 16); append a ones row to the reduced vector.
    h_aug = jnp.concatenate([h_aux, jnp.ones((1, tile_atoms), jnp.float32)], axis=0)
    out_ref[...] = jnp.dot(tt_ref[...], h_aug, preferred_element_type=jnp.float32)


# ---------------- wrapper ------------------------------------------------------
def _round_up(x, m):
    return (x + m - 1) // m * m


def _has_two_tensorcores():
    """True on dual-TensorCore chips (v7x-class); conservative fallback = False."""
    try:
        kind = (jax.devices()[0].device_kind or "").lower()
        return ("v7" in kind) or ("7x" in kind)
    except Exception:
        return False


def pao_forward(neighbors_relpos, neighbors_features, params, *, tile_atoms=1024):
    B, N, _ = neighbors_relpos.shape
    assert N == NUM_NEIGHBORS
    assert neighbors_features.shape == (B, N, NUM_FEATURES)

    # ---- tile selection ------------------------------------------------------
    # Atoms ride the 128-lane axis, so tiles are lane-aligned (multiples of 128).
    # Single-TC chips (v5e/v6e): as few grid steps as possible (big tiles).
    # Dual-TC chips (v7x): split a one-step grid in two so both cores are busy;
    # tile cap 2048 keeps the per-tile working set well under 64 MiB VMEM.
    two_tc = _has_two_tensorcores()
    ta = max(LANE, min(_round_up(int(tile_atoms), LANE), 2048))
    ta = min(ta, _round_up(B, LANE))
    if two_tc and pl.cdiv(B, ta) == 1 and ta > LANE:
        ta = _round_up(ta // 2, LANE)
    num_tiles = pl.cdiv(B, ta)
    b_pad = num_tiles * ta
    rows = NUM_NEIGHBORS * ta

    # ---- pack inputs feature-major: (8, tiles * N * tile_atoms) --------------
    packed = jnp.concatenate(
        [neighbors_relpos.astype(jnp.float32),
         neighbors_features.astype(jnp.float32),
         jnp.zeros((B, N, PACK_WIDTH - 3 - NUM_FEATURES), jnp.float32)], axis=-1)
    if b_pad != B:
        packed = jnp.concatenate(
            [packed, jnp.zeros((b_pad - B, N, PACK_WIDTH), jnp.float32)], axis=0)
    # (tiles, ta, N, 8) -> (8, tiles, N, ta) -> (8, tiles*N*ta): within each tile
    # the column index is neighbor*ta + atom (neighbor-outer, atoms on lanes).
    x2d = packed.reshape(num_tiles, ta, NUM_NEIGHBORS, PACK_WIDTH)
    x2d = jnp.transpose(x2d, (3, 0, 2, 1)).reshape(
        PACK_WIDTH, num_tiles * NUM_NEIGHBORS * ta)

    # ---- fold all scalar normalizations into the (transposed) weights --------
    act_cst = float(params["act_cst"])
    w0t = jnp.transpose(params["w0"].astype(jnp.float32) * (1.0 / 1.12))        # (32, 16)
    fold = act_cst * (NUM_LAYERS ** -0.5) * (0.5 ** 0.5)
    w1t = jnp.transpose(params["w1"].astype(jnp.float32)[:, _W1_PERM] * fold)   # (14, 32)
    tt = jnp.asarray(_TT_AUG_NP)                                                # (25, 16)

    kernel = functools.partial(
        _pao_kernel, tile_atoms=ta, num_neighbors=N, num_distances=NUM_DISTANCES,
        inv_bucket_width=float((NUM_DISTANCES - 1) / CUTOFF))

    mat_cols = pl.pallas_call(
        kernel,
        out_shape=jax.ShapeDtypeStruct((MAT_FLAT, b_pad), jnp.float32),
        grid_spec=pltpu.PrefetchScalarGridSpec(
            num_scalar_prefetch=0,
            grid=(num_tiles,),
            in_specs=[
                pl.BlockSpec((PACK_WIDTH, rows), lambda i: (0, i)),
                pl.BlockSpec((NUM_LAYERS, NUM_DISTANCES), lambda i: (0, 0)),
                pl.BlockSpec((WEIGHT_NUMEL, NUM_LAYERS), lambda i: (0, 0)),
                pl.BlockSpec((MAT_FLAT, VEC_REDUCED + 1), lambda i: (0, 0)),
            ],
            out_specs=pl.BlockSpec((MAT_FLAT, ta), lambda i: (0, i)),
        ),
        compiler_params=pltpu.CompilerParams(
            dimension_semantics=("parallel",),
            vmem_limit_bytes=48 * 1024 * 1024),
    )(x2d, w0t, w1t, tt)

    # ---- glue: unpack, symmetric eigendecomposition, basis rotation ----------
    mat_flat = jnp.transpose(mat_cols)[:B]                     # (B, 25)
    h_aux_matrix = mat_flat.reshape(B, PRIM_BASIS_SIZE, PRIM_BASIS_SIZE)
    # TODO(synk): eigendecomposition has no Pallas equivalent; torch.linalg.eigh
    # uses only the lower triangle (UPLO='L'), reproduced explicitly here in JAX.
    low = jnp.tril(h_aux_matrix)
    sym = low + jnp.swapaxes(jnp.tril(h_aux_matrix, -1), -1, -2)
    _, u_matrix = jnp.linalg.eigh(sym)                         # ascending eigenvalues
    xblock = jnp.swapaxes(u_matrix[..., :PAO_BASIS_SIZE], -1, -2)
    return {"xblock": xblock @ params["D"]}


# ---------------- main ---------------------------------------------------------
if __name__ == "__main__":
    key = jax.random.PRNGKey(0)
    k_rel, k_feat, k_w0, k_w1 = jax.random.split(key, 4)

    B = 16
    neighbors_relpos = 2.5 * jax.random.normal(k_rel, (B, NUM_NEIGHBORS, 3),
                                               dtype=jnp.float32)
    neighbors_features = jax.random.normal(k_feat, (B, NUM_NEIGHBORS, NUM_FEATURES),
                                           dtype=jnp.float32)

    params = {
        "w0": jax.random.normal(k_w0, (NUM_DISTANCES, NUM_LAYERS), dtype=jnp.float32),
        "w1": jax.random.normal(k_w1, (NUM_LAYERS, WEIGHT_NUMEL), dtype=jnp.float32),
        "D": jnp.asarray(_build_D_yzx_to_xyz()),
        "act_cst": _sigmoid_2mom_cst(),
    }

    out = pao_forward(neighbors_relpos, neighbors_features, params)
    xblock = jax.block_until_ready(out["xblock"])
    assert xblock.shape == (B, PAO_BASIS_SIZE, PRIM_BASIS_SIZE)
    assert bool(jnp.all(jnp.isfinite(xblock)))
    print("KERNEL_OK")
</pallas_src>

<mosaic_0001>
module attributes {stable_mosaic.version = 11 : i64} {
  func.func @_pao_kernel(%arg0: i32, %arg1: memref<8x1024xf32, #tpu.memory_space<vmem>>, %arg2: memref<32x16xf32, #tpu.memory_space<vmem>>, %arg3: memref<14x32xf32, #tpu.memory_space<vmem>>, %arg4: memref<25x16xf32, #tpu.memory_space<vmem>>, %arg5: memref<25x128xf32, #tpu.memory_space<vmem>>) attributes {dimension_semantics = [#tpu.dimension_semantics<parallel>], iteration_bounds = array<i64: 1>, scalar_prefetch = 0 : i64, scratch_operands = 0 : i64, tpu.core_type = #tpu.core_type<tc>, window_params = [{transform_indices = @transform_0, window_bounds = array<i64: 8, 1024>}, {pipeline_mode = #tpu.pipeline_mode<synchronous>, transform_indices = @transform_1, window_bounds = array<i64: 32, 16>}, {pipeline_mode = #tpu.pipeline_mode<synchronous>, transform_indices = @transform_2, window_bounds = array<i64: 14, 32>}, {pipeline_mode = #tpu.pipeline_mode<synchronous>, transform_indices = @transform_3, window_bounds = array<i64: 25, 16>}, {transform_indices = @transform_4, window_bounds = array<i64: 25, 128>}]} {
    %c0 = arith.constant 0 : index
    %c0_0 = arith.constant 0 : index
    %0 = vector.load %arg1[%c0, %c0_0] : memref<8x1024xf32, #tpu.memory_space<vmem>>, vector<8x1024xf32>
    %1 = vector.extract_strided_slice %0 {offsets = [0, 0], sizes = [3, 1024], strides = [1, 1]} : vector<8x1024xf32> to vector<3x1024xf32>
    %2 = vector.extract_strided_slice %0 {offsets = [3, 0], sizes = [1, 1024], strides = [1, 1]} : vector<8x1024xf32> to vector<1x1024xf32>
    %3 = vector.extract_strided_slice %0 {offsets = [4, 0], sizes = [1, 1024], strides = [1, 1]} : vector<8x1024xf32> to vector<1x1024xf32>
    %4 = arith.mulf %1, %1 : vector<3x1024xf32>
    %5 = vector.extract_strided_slice %4 {offsets = [0, 0], sizes = [1, 1024], strides = [1, 1]} : vector<3x1024xf32> to vector<1x1024xf32>
    %6 = vector.extract_strided_slice %4 {offsets = [1, 0], sizes = [1, 1024], strides = [1, 1]} : vector<3x1024xf32> to vector<1x1024xf32>
    %7 = arith.addf %5, %6 : vector<1x1024xf32>
    %8 = vector.extract_strided_slice %4 {offsets = [2, 0], sizes = [1, 1024], strides = [1, 1]} : vector<3x1024xf32> to vector<1x1024xf32>
    %9 = arith.addf %7, %8 : vector<1x1024xf32>
    %cst = arith.constant 1.000000e-24 : f32
    %10 = vector.broadcast %cst : f32 to vector<1x1024xf32>
    %11 = arith.maximumf %9, %10 : vector<1x1024xf32>
    %12 = math.rsqrt %11 : vector<1x1024xf32>
    %13 = arith.mulf %9, %12 : vector<1x1024xf32>
    %14 = vector.broadcast %12 : vector<1x1024xf32> to vector<3x1024xf32>
    %15 = arith.mulf %1, %14 : vector<3x1024xf32>
    %16 = tpu.iota {dimensions = array<i32: 0>} : vector<16x1024xi32>
    %17 = arith.sitofp %16 : vector<16x1024xi32> to vector<16x1024xf32>
    %cst_1 = arith.constant 2.500000e+00 : f32
    %18 = vector.broadcast %cst_1 : f32 to vector<1x1024xf32>
    %19 = arith.mulf %13, %18 : vector<1x1024xf32>
    %20 = vector.broadcast %19 : vector<1x1024xf32> to vector<16x1024xf32>
    %21 = arith.subf %20, %17 : vector<16x1024xf32>
    %22 = arith.mulf %21, %21 : vector<16x1024xf32>
    %cst_2 = arith.constant 0.000000e+00 : f32
    %23 = vector.broadcast %cst_2 : f32 to vector<16x1024xf32>
    %24 = arith.subf %23, %22 : vector<16x1024xf32>
    %25 = math.exp %24 : vector<16x1024xf32>
    %c0_3 = arith.constant 0 : index
    %c0_4 = arith.constant 0 : index
    %26 = vector.load %arg2[%c0_3, %c0_4] : memref<32x16xf32, #tpu.memory_space<vmem>>, vector<32x16xf32>
    %cst_5 = arith.constant dense<0.000000e+00> : vector<32x1024xf32>
    %27 = tpu.matmul %26, %25, %cst_5 {dimension_numbers = #tpu.dot_dimension_numbers<[1], [0], [0], [1], [0, 0, 1, 1], [], []>} : vector<32x16xf32>, vector<16x1024xf32>, vector<32x1024xf32> -> vector<32x1024xf32>
    %cst_6 = arith.constant 5.000000e-01 : f32
    %28 = vector.broadcast %cst_6 : f32 to vector<32x1024xf32>
    %29 = arith.mulf %28, %27 : vector<32x1024xf32>
    %30 = math.tanh %29 : vector<32x1024xf32>
    %cst_7 = arith.constant 5.000000e-01 : f32
    %31 = vector.broadcast %cst_7 : f32 to vector<32x1024xf32>
    %32 = arith.mulf %31, %30 : vector<32x1024xf32>
    %cst_8 = arith.constant 5.000000e-01 : f32
    %33 = vector.broadcast %cst_8 : f32 to vector<32x1024xf32>
    %34 = arith.addf %33, %32 : vector<32x1024xf32>
    %c0_9 = arith.constant 0 : index
    %c0_10 = arith.constant 0 : index
    %35 = vector.load %arg3[%c0_9, %c0_10] : memref<14x32xf32, #tpu.memory_space<vmem>>, vector<14x32xf32>
    %cst_11 = arith.constant dense<0.000000e+00> : vector<14x1024xf32>
    %36 = tpu.matmul %35, %34, %cst_11 {dimension_numbers = #tpu.dot_dimension_numbers<[1], [0], [0], [1], [0, 0, 1, 1], [], []>} : vector<14x32xf32>, vector<32x1024xf32>, vector<14x1024xf32> -> vector<14x1024xf32>
    %37 = vector.extract_strided_slice %36 {offsets = [0, 0], sizes = [7, 1024], strides = [1, 1]} : vector<14x1024xf32> to vector<7x1024xf32>
    %38 = vector.broadcast %2 : vector<1x1024xf32> to vector<7x1024xf32>
    %39 = arith.mulf %37, %38 : vector<7x1024xf32>
    %40 = vector.extract_strided_slice %36 {offsets = [7, 0], sizes = [7, 1024], strides = [1, 1]} : vector<14x1024xf32> to vector<7x1024xf32>
    %41 = vector.broadcast %3 : vector<1x1024xf32> to vector<7x1024xf32>
    %42 = arith.mulf %40, %41 : vector<7x1024xf32>
    %43 = arith.addf %39, %42 : vector<7x1024xf32>
    %44 = vector.extract_strided_slice %15 {offsets = [0, 0], sizes = [1, 1024], strides = [1, 1]} : vector<3x1024xf32> to vector<1x1024xf32>
    %45 = vector.extract_strided_slice %15 {offsets = [1, 0], sizes = [1, 1024], strides = [1, 1]} : vector<3x1024xf32> to vector<1x1024xf32>
    %46 = vector.extract_strided_slice %15 {offsets = [2, 0], sizes = [1, 1024], strides = [1, 1]} : vector<3x1024xf32> to vector<1x1024xf32>
    %cst_12 = arith.constant 1.73205078 : f32
    %47 = vector.broadcast %cst_12 : f32 to vector<3x1024xf32>
    %48 = arith.mulf %47, %15 : vector<3x1024xf32>
    %cst_13 = arith.constant 3.87298346 : f32
    %49 = vector.broadcast %cst_13 : f32 to vector<1x1024xf32>
    %50 = arith.mulf %49, %44 : vector<1x1024xf32>
    %51 = arith.mulf %50, %46 : vector<1x1024xf32>
    %cst_14 = arith.constant 3.87298346 : f32
    %52 = vector.broadcast %cst_14 : f32 to vector<1x1024xf32>
    %53 = arith.mulf %52, %44 : vector<1x1024xf32>
    %54 = arith.mulf %53, %45 : vector<1x1024xf32>
    %55 = arith.mulf %45, %45 : vector<1x1024xf32>
    %56 = arith.mulf %44, %44 : vector<1x1024xf32>
    %57 = arith.mulf %46, %46 : vector<1x1024xf32>
    %58 = arith.addf %56, %57 : vector<1x1024xf32>
    %cst_15 = arith.constant 5.000000e-01 : f32
    %59 = vector.broadcast %cst_15 : f32 to vector<1x1024xf32>
    %60 = arith.mulf %59, %58 : vector<1x1024xf32>
    %61 = arith.subf %55, %60 : vector<1x1024xf32>
    %cst_16 = arith.constant 2.23606801 : f32
    %62 = vector.broadcast %cst_16 : f32 to vector<1x1024xf32>
    %63 = arith.mulf %62, %61 : vector<1x1024xf32>
    %cst_17 = arith.constant 3.87298346 : f32
    %64 = vector.broadcast %cst_17 : f32 to vector<1x1024xf32>
    %65 = arith.mulf %64, %45 : vector<1x1024xf32>
    %66 = arith.mulf %65, %46 : vector<1x1024xf32>
    %67 = arith.mulf %46, %46 : vector<1x1024xf32>
    %68 = arith.mulf %44, %44 : vector<1x1024xf32>
    %69 = arith.subf %67, %68 : vector<1x1024xf32>
    %cst_18 = arith.constant 1.93649173 : f32
    %70 = vector.broadcast %cst_18 : f32 to vector<1x1024xf32>
    %71 = arith.mulf %70, %69 : vector<1x1024xf32>
    %72 = tpu.concatenate %51, %54, %63, %66, %71 in 0 : vector<1x1024xf32>, vector<1x1024xf32>, vector<1x1024xf32>, vector<1x1024xf32>, vector<1x1024xf32> -> vector<5x1024xf32>
    %73 = vector.extract_strided_slice %43 {offsets = [0, 0], sizes = [4, 1024], strides = [1, 1]} : vector<7x1024xf32> to vector<4x1024xf32>
    %74 = vector.extract_strided_slice %43 {offsets = [4, 0], sizes = [1, 1024], strides = [1, 1]} : vector<7x1024xf32> to vector<1x1024xf32>
    %75 = vector.broadcast %74 : vector<1x1024xf32> to vector<3x1024xf32>
    %76 = arith.mulf %75, %48 : vector<3x1024xf32>
    %77 = vector.extract_strided_slice %43 {offsets = [5, 0], sizes = [1, 1024], strides = [1, 1]} : vector<7x1024xf32> to vector<1x1024xf32>
    %78 = vector.broadcast %77 : vector<1x1024xf32> to vector<3x1024xf32>
    %79 = arith.mulf %78, %48 : vector<3x1024xf32>
    %80 = vector.extract_strided_slice %43 {offsets = [6, 0], sizes = [1, 1024], strides = [1, 1]} : vector<7x1024xf32> to vector<1x1024xf32>
    %81 = vector.broadcast %80 : vector<1x1024xf32> to vector<5x1024xf32>
    %82 = arith.mulf %81, %72 : vector<5x1024xf32>
    %83 = tpu.concatenate %73, %76, %79, %82 in 0 : vector<4x1024xf32>, vector<3x1024xf32>, vector<3x1024xf32>, vector<5x1024xf32> -> vector<15x1024xf32>
    %84 = vector.extract_strided_slice %83 {offsets = [0, 0], sizes = [15, 128], strides = [1, 1]} : vector<15x1024xf32> to vector<15x128xf32>
    %85 = vector.extract_strided_slice %83 {offsets = [0, 128], sizes = [15, 128], strides = [1, 1]} : vector<15x1024xf32> to vector<15x128xf32>
    %86 = arith.addf %84, %85 : vector<15x128xf32>
    %87 = vector.extract_strided_slice %83 {offsets = [0, 256], sizes = [15, 128], strides = [1, 1]} : vector<15x1024xf32> to vector<15x128xf32>
    %88 = arith.addf %86, %87 : vector<15x128xf32>
    %89 = vector.extract_strided_slice %83 {offsets = [0, 384], sizes = [15, 128], strides = [1, 1]} : vector<15x1024xf32> to vector<15x128xf32>
    %90 = arith.addf %88, %89 : vector<15x128xf32>
    %91 = vector.extract_strided_slice %83 {offsets = [0, 512], sizes = [15, 128], strides = [1, 1]} : vector<15x1024xf32> to vector<15x128xf32>
    %92 = arith.addf %90, %91 : vector<15x128xf32>
    %93 = vector.extract_strided_slice %83 {offsets = [0, 640], sizes = [15, 128], strides = [1, 1]} : vector<15x1024xf32> to vector<15x128xf32>
    %94 = arith.addf %92, %93 : vector<15x128xf32>
    %95 = vector.extract_strided_slice %83 {offsets = [0, 768], sizes = [15, 128], strides = [1, 1]} : vector<15x1024xf32> to vector<15x128xf32>
    %96 = arith.addf %94, %95 : vector<15x128xf32>
    %97 = vector.extract_strided_slice %83 {offsets = [0, 896], sizes = [15, 128], strides = [1, 1]} : vector<15x1024xf32> to vector<15x128xf32>
    %98 = arith.addf %96, %97 : vector<15x128xf32>
    %cst_19 = arith.constant 1.000000e+00 : f32
    %99 = vector.broadcast %cst_19 : f32 to vector<1x128xf32>
    %100 = tpu.concatenate %98, %99 in 0 : vector<15x128xf32>, vector<1x128xf32> -> vector<16x128xf32>
    %c0_20 = arith.constant 0 : index
    %c0_21 = arith.constant 0 : index
    %101 = vector.load %arg4[%c0_20, %c0_21] : memref<25x16xf32, #tpu.memory_space<vmem>>, vector<25x16xf32>
    %cst_22 = arith.constant dense<0.000000e+00> : vector<25x128xf32>
    %102 = tpu.matmul %101, %100, %cst_22 {dimension_numbers = #tpu.dot_dimension_numbers<[1], [0], [0], [1], [0, 0, 1, 1], [], []>} : vector<25x16xf32>, vector<16x128xf32>, vector<25x128xf32> -> vector<25x128xf32>
    %c0_23 = arith.constant 0 : index
    %c0_24 = arith.constant 0 : index
    %103 = vector.load %arg5[%c0_23, %c0_24] : memref<25x128xf32, #tpu.memory_space<vmem>>, vector<25x128xf32>
    tpu.vector_store %arg5[%c0_23, %c0_24], %102 {strides = array<i32>} : memref<25x128xf32, #tpu.memory_space<vmem>>, vector<25x128xf32>,
    return
  }
  func.func @transform_0(%arg0: i32) -> (i32, i32) {
    %c0_i32 = arith.constant 0 : i32
    %c0_i32_0 = arith.constant 0 : i32
    return %c0_i32, %arg0 : i32, i32
  }
  func.func @transform_1(%arg0: i32) -> (i32, i32) {
    %c0_i32 = arith.constant 0 : i32
    %c0_i32_0 = arith.constant 0 : i32
    %c0_i32_1 = arith.constant 0 : i32
    return %c0_i32, %c0_i32_0 : i32, i32
  }
  func.func @transform_2(%arg0: i32) -> (i32, i32) {
    %c0_i32 = arith.constant 0 : i32
    %c0_i32_0 = arith.constant 0 : i32
    %c0_i32_1 = arith.constant 0 : i32
    return %c0_i32, %c0_i32_0 : i32, i32
  }
  func.func @transform_3(%arg0: i32) -> (i32, i32) {
    %c0_i32 = arith.constant 0 : i32
    %c0_i32_0 = arith.constant 0 : i32
    %c0_i32_1 = arith.constant 0 : i32
    return %c0_i32, %c0_i32_0 : i32, i32
  }
  func.func @transform_4(%arg0: i32) -> (i32, i32) {
    %c0_i32 = arith.constant 0 : i32
    %c0_i32_0 = arith.constant 0 : i32
    return %c0_i32, %arg0 : i32, i32
  }
}

</mosaic_0001>

<bundles_post_ra>
// kernel: tpu_custom_call.1
= control target key start
LH: loop header
LB: loop body
LE: loop exit
PB: predicated region body
PF: predicated region fallthrough
CT: control target
= control target key end

     0   :  { %v2156_v4 = vmov 0.0   ;;  %s2919_s0 = inlined_call_operand.vmem [shape: f32[8,1024], index: 0, kind: input, shape index: {}]   ;;  %s2920_s1 = inlined_call_operand.vmem [shape: f32[32,16], index: 1, kind: input, shape index: {}]   ;;  %s2921_s2 = inlined_call_operand.vmem [shape: f32[14,32], index: 2, kind: input, shape index: {}]   ;;  %s2922_s3 = inlined_call_operand.vmem [shape: f32[25,16], index: 3, kind: input, shape index: {}]   ;;  %s2923_s4 = inlined_call_operand.hbm [shape: f32[25,128], index: 4, kind: output, shape index: {}]  }
   0x1   :  { %v2188_v0 = vld [vmem:[%s2919_s0 + $0x8] sm:$0xff]  ;;  %v2193_v1 = vld [vmem:[%s2919_s0] sm:$0xff]  ;;  %360 = vmatprep.mubr.f32.mxu0 %v2156_v4  ;;  %378 = vmatprep.mubr.f32.mxu1 %v2156_v4  ;;  %v21_v5 = vld [vmem:[%s2919_s0 + $0x18] sm:$0xff] }
   0x2   :  { %v27_v2 = vmul.f32 %v2188_v0, %v2188_v0  ;;  %v26_v3 = vmul.f32 %v2193_v1, %v2193_v1  ;;  %v2207_v6 = vld [vmem:[%s2919_s0 + $0x10] sm:$0xff]  ;;  %v29_v7 = vmul.f32 %v21_v5, %v21_v5  ;;  %v23_v13 = vld [vmem:[%s2919_s0 + $0x28] sm:$0xff]  ;;  %v25_v15 = vld [vmem:[%s2919_s0 + $0x38] sm:$0xff] }
   0x3   :  { %v28_v8 = vmul.f32 %v2207_v6, %v2207_v6 }
   0x4   :  { %v43_v9 = vrot.slane %v27_v2, 1  ;;  %v67_v10 = vrot.slane %v27_v2, 2  ;;  %v42_v11 = vrot.slane %v26_v3, 1  ;;  %v66_v12 = vrot.slane %v26_v3, 2 }
   0x5   :  { %v45_v14 = vrot.slane %v29_v7, 1 }
   0x6   :  { %9 = vsyncpa [#allocation3], 0  ;;  %v59_v16 = vadd.f32 %v43_v9, %v27_v2  ;;  %v58_v17 = vadd.f32 %v42_v11, %v26_v3  ;;  %v69_v18 = vrot.slane %v29_v7, 2  ;;  %v44_v19 = vrot.slane %v28_v8, 1  ;;  %v22_v20 = vld [vmem:[%s2919_s0 + $0x20] sm:$0xff]  ;;  %v24_v36 = vld [vmem:[%s2919_s0 + $0x30] sm:$0xff] }
   0x7   :  { %v61_v21 = vadd.f32 %v45_v14, %v29_v7  ;;  %v68_v22 = vrot.slane %v28_v8, 2  ;;  %v31_v23 = vmul.f32 %v23_v13, %v23_v13  ;;  %v33_v27 = vmul.f32 %v25_v15, %v25_v15  ;;  %s2157_s12 = smov [#allocation2]  }
   0x8   :  { %v83_v24 = vadd.f32 %v67_v10, %v59_v16  ;;  %v82_v25 = vadd.f32 %v66_v12, %v58_v17  ;;  %v60_v26 = vadd.f32 %v44_v19, %v28_v8  ;;  %v30_v31 = vmul.f32 %v22_v20, %v22_v20 }
   0x9   :  { %v85_v28 = vadd.f32 %v69_v18, %v61_v21  ;;  %v47_v29 = vrot.slane %v31_v23, 1  ;;  %v71_v30 = vrot.slane %v31_v23, 2  ;;  %v49_v35 = vrot.slane %v33_v27, 1 }
   0xa   :  { %v91_v32 = vmax.f32 %v83_v24, 1e-24  ;;  %v90_v33 = vmax.f32 %v82_v25, 1e-24  ;;  %v84_v34 = vadd.f32 %v68_v22, %v60_v26  ;;  %v73_v39 = vrot.slane %v33_v27, 2 }
   0xb   :  { %v93_v37 = vmax.f32 %v85_v28, 1e-24  ;;  %v63_v38 = vadd.f32 %v47_v29, %v31_v23  ;;  %v46_v40 = vrot.slane %v30_v31, 1  ;;  %v65_v42 = vadd.f32 %v49_v35, %v33_v27 }
   0xc   :  { %2012 = vrsqrt.f32 %v91_v32  ;;  %v92_v41 = vmax.f32 %v84_v34, 1e-24  ;;  %v114_v43 = vlaneseq  ;;  %v32_v45 = vmul.f32 %v24_v36, %v24_v36 }
   0xd   :  { %2014 = vrsqrt.f32 %v90_v33  ;;  %v87_v44 = vadd.f32 %v71_v30, %v63_v38  ;;  %v89_v46 = vadd.f32 %v73_v39, %v65_v42  ;;  %v62_v47 = vadd.f32 %v46_v40, %v30_v31 }
   0xe   :  { %2016 = vrsqrt.f32 %v93_v37  ;;  %v70_v48 = vrot.slane %v30_v31, 2  ;;  %v48_v50 = vrot.slane %v32_v45, 1  ;;  %v72_v52 = vrot.slane %v32_v45, 2 }
   0xf   :  { %2018 = vrsqrt.f32 %v92_v41  ;;  %v95_v49 = vmax.f32 %v87_v44, 1e-24  ;;  %v97_v51 = vmax.f32 %v89_v46, 1e-24  ;;  %v2223_v53 = vshrl.u32 %v114_v43, 7 }
  0x10   :  { %v64_v54 = vadd.f32 %v48_v50, %v32_v45  ;;  %v2225_v55 = vadd.f32 %v70_v48, %v62_v47  ;;  %vm283_vm0 = vcmask 130048   ;;  %vm782_vm1 = vcmask 261120  }
  0x11   :  { %2020 = vrsqrt.f32 %v95_v49  ;;  %v156_v57 = vadd.s32 8, %v2223_v53  ;;  %v2237_v62 = vsub.s32 0, %v2223_v53  ;;  %v2246_v7 = vcvt.s32.f32 %v2223_v53 }
  0x12   :  { %2022 = vrsqrt.f32 %v97_v51  ;;  %v2227_v56 = vadd.f32 %v72_v52, %v64_v54  ;;  %v94_v59 = vmax.f32 %v2225_v55, 1e-24  ;;  %vm1201_vm2 = vcmask 1040384  }
  0x13   :  { %v2248_v8 = vcvt.s32.f32 %v156_v57  ;;  %vm1530_vm3 = vcmask 1041408   ;;  %vm1539_vm4 = vcmask 1042432   ;;  %vm1548_vm5 = vcmask 1043456  }
  0x14   :  { %v96_v63 = vmax.f32 %v2227_v56, 1e-24  ;;  %2024 = vrsqrt.f32 %v94_v59  ;;  %vm1757_vm6 = vcmask 1046528  }
  0x16   :  { %v2230_v58 = vpop.eup %2012  ;;  %2026 = vrsqrt.f32 %v96_v63 }
  0x17   :  { %v2233_v60 = vpop.eup %2014  ;;  %v107_v61 = vmul.f32 %v2230_v58, %v83_v24 }
  0x18   :  { %v2240_v2 = vpop.eup %2016  ;;  %v106_v3 = vmul.f32 %v2233_v60, %v82_v25 }
  0x19   :  { %v2243_v5 = vpop.eup %2018  ;;  %v160_v9 = vmul.f32 2.5, %v107_v61  ;;  %v109_v10 = vmul.f32 %v2240_v2, %v85_v28 }
  0x1a   :  { %v159_v11 = vmul.f32 2.5, %v106_v3  ;;  %v108_v12 = vmul.f32 %v2243_v5, %v84_v34 }
  0x1b   :  { %v2252_v13 = vpop.eup %2020  ;;  %v174_v14 = vrot.slane %v160_v9, %v2237_v62  ;;  %v162_v15 = vmul.f32 2.5, %v109_v10 }
  0x1c   :  { %v2255_v16 = vpop.eup %2022  ;;  %v170_v17 = vrot.slane %v159_v11, %v2237_v62  ;;  %v161_v18 = vmul.f32 2.5, %v108_v12  ;;  %v111_v19 = vmul.f32 %v2252_v13, %v87_v44 }
  0x1d   :  { %v200_v20 = vsub.f32 %v174_v14, %v2246_v7  ;;  %v208_v21 = vsub.f32 %v174_v14, %v2248_v8  ;;  %v182_v22 = vrot.slane %v162_v15, %v2237_v62  ;;  %v113_v23 = vmul.f32 %v2255_v16, %v89_v46 }
  0x1e   :  { %v199_v24 = vsub.f32 %v170_v17, %v2246_v7  ;;  %v207_v25 = vsub.f32 %v170_v17, %v2248_v8  ;;  %v178_v26 = vrot.slane %v161_v18, %v2237_v62  ;;  %v164_v27 = vmul.f32 2.5, %v111_v19  ;;  %v2270_v48 = vpop.eup %2024 }
  0x1f   :  { %v216_v28 = vmul.f32 %v200_v20, %v200_v20  ;;  %v224_v29 = vmul.f32 %v208_v21, %v208_v21  ;;  %v202_v30 = vsub.f32 %v182_v22, %v2246_v7  ;;  %v210_v31 = vsub.f32 %v182_v22, %v2248_v8 }
  0x20   :  { %v215_v32 = vmul.f32 %v199_v24, %v199_v24  ;;  %v223_v33 = vmul.f32 %v207_v25, %v207_v25  ;;  %v201_v34 = vsub.f32 %v178_v26, %v2246_v7  ;;  %v209_v35 = vsub.f32 %v178_v26, %v2248_v8  ;;  %v2272_v54 = vpop.eup %2026 }
  0x21   :  { %v232_v36 = vsub.f32 0.0, %v216_v28  ;;  %v240_v37 = vsub.f32 0.0, %v224_v29  ;;  %v218_v38 = vmul.f32 %v202_v30, %v202_v30  ;;  %v226_v39 = vmul.f32 %v210_v31, %v210_v31 }
  0x22   :  { %v231_v40 = vsub.f32 0.0, %v215_v32  ;;  %v239_v41 = vsub.f32 0.0, %v223_v33  ;;  %v217_v42 = vmul.f32 %v201_v34, %v201_v34  ;;  %v225_v43 = vmul.f32 %v209_v35, %v209_v35 }
  0x23   :  { %v249_v44 = vmul.f32 1.442695, %v232_v36  ;;  %v265_v45 = vmul.f32 1.442695, %v240_v37  ;;  %v234_v46 = vsub.f32 0.0, %v218_v38  ;;  %v242_v47 = vsub.f32 0.0, %v226_v39 }
  0x24   :  { %v247_v49 = vmul.f32 1.442695, %v231_v40  ;;  %v263_v50 = vmul.f32 1.442695, %v239_v41  ;;  %v233_v51 = vsub.f32 0.0, %v217_v42  ;;  %v241_v52 = vsub.f32 0.0, %v225_v43 }
  0x25   :  { %2028 = vpow2.f32 %v249_v44  ;;  %v253_v57 = vmul.f32 1.442695, %v234_v46  ;;  %v190_v59 = vrot.slane %v164_v27, %v2237_v62  ;;  %v269_v61 = vmul.f32 1.442695, %v242_v47 }
  0x26   :  { %2030 = vpow2.f32 %v265_v45  ;;  %v251_v63 = vmul.f32 1.442695, %v233_v51  ;;  %v166_v3 = vmul.f32 2.5, %v113_v23  ;;  %v110_v11 = vmul.f32 %v2270_v48, %v2225_v55 }
  0x27   :  { %2032 = vpow2.f32 %v247_v49  ;;  %v204_v9 = vsub.f32 %v190_v59, %v2246_v7  ;;  %v212_v10 = vsub.f32 %v190_v59, %v2248_v8  ;;  %v267_v12 = vmul.f32 1.442695, %v241_v52 }
  0x28   :  { %2034 = vpow2.f32 %v263_v50  ;;  %v198_v14 = vrot.slane %v166_v3, %v2237_v62  ;;  %v112_v15 = vmul.f32 %v2272_v54, %v2227_v56  ;;  %v163_v19 = vmul.f32 2.5, %v110_v11  ;;  %v282_v3 = vld [vmem:[%s2920_s1 + $0x18] sm:$0xff] }
  0x29   :  { %2036 = vpow2.f32 %v253_v57  ;;  %v220_v17 = vmul.f32 %v204_v9, %v204_v9  ;;  %v228_v18 = vmul.f32 %v212_v10, %v212_v10 }
  0x2a   :  { %2038 = vpow2.f32 %v269_v61  ;;  %v206_v20 = vsub.f32 %v198_v14, %v2246_v7  ;;  %v214_v21 = vsub.f32 %v198_v14, %v2248_v8  ;;  %v165_v22 = vmul.f32 2.5, %v112_v15  ;;  %v280_v15 = vld [vmem:[%s2920_s1 + $0x8] sm:$0xff] }
  0x2b   :  { %2040 = vpow2.f32 %v251_v63  ;;  %v236_v23 = vsub.f32 0.0, %v220_v17  ;;  %v244_v55 = vsub.f32 0.0, %v228_v18  ;;  %v186_v24 = vrot.slane %v163_v19, %v2237_v62  ;;  %v279_v63 = vld [vmem:[%s2920_s1] sm:$0xff] }
  0x2c   :  { %2042 = vpow2.f32 %v267_v12  ;;  %v222_v25 = vmul.f32 %v206_v20, %v206_v20  ;;  %v230_v26 = vmul.f32 %v214_v21, %v214_v21  ;;  %v194_v56 = vrot.slane %v165_v22, %v2237_v62  ;;  %v281_v21 = vld [vmem:[%s2920_s1 + $0x10] sm:$0xff]  ;;  %s1899_s1 = sshll.u32 %s2157_s12, 4  ;;  %s1900_s1 = int_to_ptr.vmem [resolvable:$true] %s1899_s1 }
  0x2d   :  { %v257_v27 = vmul.f32 1.442695, %v236_v23  ;;  %v273_v28 = vmul.f32 1.442695, %v244_v55  ;;  %v203_v29 = vsub.f32 %v186_v24, %v2246_v7  ;;  %v211_v30 = vsub.f32 %v186_v24, %v2248_v8  ;;  %s2132_s13 = scalar_lea.vmem %s1900_s1, 512  ;;  %p2137_p1 = scmp.lt.s32.totalorder %s1900_s1, %s1900_s1 }
  0x2e   :  { %v238_v31 = vsub.f32 0.0, %v222_v25  ;;  %v246_v32 = vsub.f32 0.0, %v230_v26  ;;  %v205_v33 = vsub.f32 %v194_v56, %v2246_v7  ;;  %v213_v34 = vsub.f32 %v194_v56, %v2248_v8  ;;  %p2133_p0 = scmp.ne.s32.totalorder %s1900_s1, %s2132_s13  ;;  %p2138_p2 = scmp.lt.s32.totalorder %s2132_s13, %s2132_s13 }
  0x2f   :  { %v2029_v35 = vpop.eup %2028  ;;  %2044 = vpow2.f32 %v257_v27  ;;  %v219_v36 = vmul.f32 %v203_v29, %v203_v29  ;;  %v227_v37 = vmul.f32 %v211_v30, %v211_v30 }
  0x30   :  { %v2031_v38 = vpop.eup %2030  ;;  %2046 = vpow2.f32 %v273_v28  ;;  %v261_v39 = vmul.f32 1.442695, %v238_v31  ;;  %v277_v40 = vmul.f32 1.442695, %v246_v32  ;;  %v221_v41 = vmul.f32 %v205_v33, %v205_v33  ;;  %p2139_p3 = por %p2138_p2, %p2137_p1 }
  0x31   :  { %v2033_v42 = vpop.eup %2032  ;;  %v1954_v43 = vpack.c.bf16 %v2031_v38, %v2029_v35  ;;  %v235_v44 = vsub.f32 0.0, %v219_v36  ;;  %v243_v45 = vsub.f32 0.0, %v227_v37  ;;  %v229_v46 = vmul.f32 %v213_v34, %v213_v34 }
  0x32   :  { %v2035_v47 = vpop.eup %2034  ;;  %2048 = vpow2.f32 %v261_v39  ;;  %v237_v49 = vsub.f32 0.0, %v221_v41  ;;  %p2140_p4 = pnand %p2139_p3, %p2133_p0 }
  0x33   :  { %v2037_v7 = vpop.eup %2036  ;;  %1955 = vmatprep.subr.bf16.mxu0 %v1954_v43  ;;  %2006 = vmatprep.subr.bf16.mxu1 %v1954_v43  ;;  %v1956_v8 = vpack.c.bf16 %v2035_v47, %v2033_v42  ;;  %2050 = vpow2.f32 %v277_v40  ;;  %v255_v50 = vmul.f32 1.442695, %v235_v44  ;;  %v271_v51 = vmul.f32 1.442695, %v243_v45 }
  0x34   :  { %v2039_v52 = vpop.eup %2038  ;;  %v245_v57 = vsub.f32 0.0, %v229_v46  ;;  %v259_v59 = vmul.f32 1.442695, %v237_v49 }
  0x35   :  { %v2041_v61 = vpop.eup %2040  ;;  %1957 = vmatpush1.bf16.msra.mxu0 %v1956_v8  ;;  %2007 = vmatpush1.bf16.msra.mxu1 %v1956_v8  ;;  %v1958_v9 = vpack.c.bf16 %v2039_v52, %v2037_v7  ;;  %2052 = vpow2.f32 %v255_v50 }
  0x36   :  { %v2043_v10 = vpop.eup %2042  ;;  %2054 = vpow2.f32 %v271_v51  ;;  %v275_v11 = vmul.f32 1.442695, %v245_v57 }
  0x37   :  { %1959 = vmatprep.subr.bf16.mxu1 %v1958_v9  ;;  %v1960_v12 = vpack.c.bf16 %v2043_v10, %v2041_v61  ;;  %2056 = vpow2.f32 %v259_v59 }
  0x38   :  { %1910 = vmatmul.mubr.msk.f32.vlgmr.msra.gmra.mrb[0].mxu0 %vm283_vm0, %v279_v63  ;;  %1913 = vmatmul.mubr.msk.f32.vlgmr.msra.gmra.mrb[0].mxu1 %vm283_vm0, %v282_v3  ;;  %2058 = vpow2.f32 %v275_v11 }
  0x39   :  { %v2045_v14 = vpop.eup %2044  ;;  %1961 = vmatpush1.bf16.msra.mxu1 %v1960_v12  ;;  %366 = vmatprep.mubr.f32.mxu0 %v2156_v4 }
  0x3a   :  { %v2047_v17 = vpop.eup %2046  ;;  %449 = vmatprep.mubr.f32.mxu1 %v2156_v4 }
  0x3b   :  { %v1962_v18 = vpack.c.bf16 %v2047_v17, %v2045_v14 }
  0x3c   :  { %v2049_v19 = vpop.eup %2048  ;;  %1911 = vmatmul.mubr.msk.f32.gmra.mrb[2].mxu0 %vm283_vm0, %v280_v15  ;;  %1914 = vmatmul.mubr.msk.f32.vlgmr.msra.gmra.mrb[2].mxu1 %vm283_vm0, %v279_v63 }
  0x3d   :  { %v2051_v20 = vpop.eup %2050  ;;  %372 = vmatprep.mubr.f32.mxu0 %v2156_v4  ;;  %455 = vmatprep.mubr.f32.mxu1 %v2156_v4 }
  0x3e   :  { %1963 = vmatprep.subr.bf16.mxu0 %v1962_v18  ;;  %v1966_v22 = vpack.c.bf16 %v2051_v20, %v2049_v19 }
  0x3f   :  { %v2053_v23 = vpop.eup %2052 }
  0x40   :  { %v2055_v55 = vpop.eup %2054  ;;  %1912 = vmatmul.mubr.msk.f32.gmra.mrb[4].mxu0 %vm283_vm0, %v281_v21  ;;  %1915 = vmatmul.mubr.msk.f32.gmra.mrb[4].mxu1 %vm283_vm0, %v280_v15 }
  0x41   :  { %v2057_v24 = vpop.eup %2056  ;;  %1967 = vmatprep.subr.bf16.mxu1 %v1966_v22  ;;  %v1964_v25 = vpack.c.bf16 %v2055_v55, %v2053_v23  ;;  %461 = vmatprep.mubr.f32.mxu1 %v2156_v4 }
  0x42   :  { %v2059_v26 = vpop.eup %2058  ;;  %538 = vmatprep.mubr.f32.mxu0 %v2156_v4 }
  0x43   :  { %1965 = vmatpush1.bf16.msra.mxu0 %v1964_v25  ;;  %v1968_v56 = vpack.c.bf16 %v2059_v26, %v2057_v24 }
  0x44   :  { %1916 = vmatmul.mubr.msk.f32.gmra.mrb[6].mxu1 %vm283_vm0, %v281_v21 }
  0x45   :  { %1969 = vmatpush1.bf16.msra.mxu1 %v1968_v56  ;;  %467 = vmatprep.mubr.f32.mxu1 %v2156_v4 }
  0x46   :  { %1918 = vmatmul.mubr.msk.f32.vlgmr.msra.gmra.mrb[6].mxu0 %vm283_vm0, %v279_v63 }
  0x47   :  { %544 = vmatprep.mubr.f32.mxu0 %v2156_v4 }
  0x48   :  { %1917 = vmatmul.mubr.msk.f32.gmra.mrb[8].mxu1 %vm283_vm0, %v282_v3 }
  0x49   :  { %627 = vmatprep.mubr.f32.mxu1 %v2156_v4 }
  0x4a   :  { %1919 = vmatmul.mubr.msk.f32.gmra.mrb[8].mxu0 %vm283_vm0, %v280_v15 }
  0x4b   :  { %550 = vmatprep.mubr.f32.mxu0 %v2156_v4 }
  0x4c   :  { %1922 = vmatmul.mubr.msk.f32.vlgmr.msra.gmra.mrb[10].mxu1 %vm283_vm0, %v279_v63 }
  0x4d   :  { %633 = vmatprep.mubr.f32.mxu1 %v2156_v4 }
  0x4e   :  { %1920 = vmatmul.mubr.msk.f32.gmra.mrb[10].mxu0 %vm283_vm0, %v281_v21 }
  0x4f   :  { %556 = vmatprep.mubr.f32.mxu0 %v2156_v4 }
  0x50   :  { %1923 = vmatmul.mubr.msk.f32.gmra.mrb[12].mxu1 %vm283_vm0, %v280_v15 }
  0x51   :  { %639 = vmatprep.mubr.f32.mxu1 %v2156_v4 }
  0x52   :  { %1921 = vmatmul.mubr.msk.f32.gmra.mrb[12].mxu0 %vm283_vm0, %v282_v3 }
  0x53   :  { %853 = vmatprep.mubr.f32.mxu0 %v2156_v4 }
  0x54   :  { %1924 = vmatmul.mubr.msk.f32.gmra.mrb[14].mxu1 %vm283_vm0, %v281_v21 }
  0x55   :  { %645 = vmatprep.mubr.f32.mxu1 %v2156_v4 }
  0x58   :  { %1925 = vmatmul.mubr.msk.f32.gmra.mrb[16].mxu1 %vm283_vm0, %v282_v3 }
  0x59   :  { %930 = vmatprep.mubr.f32.mxu1 %v2156_v4 }
 0x10b   :  { %v380_v27 = vpop.f32.mrb[0].mxu1  ;;  %v362_v28 = vpop.f32.mrb[0].mxu0 }
 0x10c   :  { %v676_v29 = vmul.f32 0.5, %v380_v27  ;;  %v382_v30 = vpop.f32.mrb[1].mxu1  ;;  %v652_v31 = vmul.f32 0.5, %v362_v28  ;;  %v364_v32 = vpop.f32.mrb[1].mxu0 }
 0x10d   :  { %v677_v33 = vmul.f32 0.5, %v382_v30  ;;  %v653_v34 = vmul.f32 0.5, %v364_v32 }
 0x10e   :  { %2060 = vtanh.f32 %v676_v29 }
 0x10f   :  { %2062 = vtanh.f32 %v677_v33  ;;  %v368_v35 = vpop.f32.mrb[2].mxu0  ;;  %v451_v36 = vpop.f32.mrb[2].mxu1 }
 0x110   :  { %2064 = vtanh.f32 %v652_v31  ;;  %v660_v37 = vmul.f32 0.5, %v368_v35  ;;  %v654_v38 = vmul.f32 0.5, %v451_v36  ;;  %v370_v39 = vpop.f32.mrb[3].mxu0  ;;  %v453_v40 = vpop.f32.mrb[3].mxu1 }
 0x111   :  { %2066 = vtanh.f32 %v653_v34  ;;  %v661_v41 = vmul.f32 0.5, %v370_v39  ;;  %v655_v42 = vmul.f32 0.5, %v453_v40 }
 0x112   :  { %2068 = vtanh.f32 %v660_v37 }
 0x113   :  { %2070 = vtanh.f32 %v654_v38  ;;  %v374_v43 = vpop.f32.mrb[4].mxu0  ;;  %v457_v44 = vpop.f32.mrb[4].mxu1 }
 0x114   :  { %2072 = vtanh.f32 %v661_v41  ;;  %v668_v45 = vmul.f32 0.5, %v374_v43  ;;  %v662_v46 = vmul.f32 0.5, %v457_v44  ;;  %v376_v47 = vpop.f32.mrb[5].mxu0  ;;  %v459_v49 = vpop.f32.mrb[5].mxu1 }
 0x115   :  { %2074 = vtanh.f32 %v655_v42  ;;  %v669_v7 = vmul.f32 0.5, %v376_v47  ;;  %v663_v8 = vmul.f32 0.5, %v459_v49 }
 0x116   :  { %2076 = vtanh.f32 %v668_v45 }
 0x117   :  { %2078 = vtanh.f32 %v662_v46  ;;  %v463_v50 = vpop.f32.mrb[6].mxu1 }
 0x118   :  { %v2061_v51 = vpop.eup %2060  ;;  %2080 = vtanh.f32 %v669_v7  ;;  %v670_v52 = vmul.f32 0.5, %v463_v50  ;;  %v465_v57 = vpop.f32.mrb[7].mxu1 }
 0x119   :  { %v2063_v59 = vpop.eup %2062  ;;  %v740_v61 = vmul.f32 0.5, %v2061_v51  ;;  %2082 = vtanh.f32 %v663_v8  ;;  %v671_v63 = vmul.f32 0.5, %v465_v57  ;;  %v540_v3 = vpop.f32.mrb[6].mxu0 }
 0x11a   :  { %v2065_v9 = vpop.eup %2064  ;;  %v741_v10 = vmul.f32 0.5, %v2063_v59  ;;  %2084 = vtanh.f32 %v670_v52  ;;  %v656_v11 = vmul.f32 0.5, %v540_v3  ;;  %v542_v12 = vpop.f32.mrb[7].mxu0 }
 0x11b   :  { %v2067_v14 = vpop.eup %2066  ;;  %v716_v15 = vmul.f32 0.5, %v2065_v9  ;;  %2086 = vtanh.f32 %v671_v63  ;;  %v657_v17 = vmul.f32 0.5, %v542_v12  ;;  %v469_v18 = vpop.f32.mrb[8].mxu1  ;;  %v2334_v20 = vadd.f32 0.5, %v740_v61 }
 0x11c   :  { %v2069_v19 = vpop.eup %2068  ;;  %v717_v21 = vmul.f32 0.5, %v2067_v14  ;;  %2088 = vtanh.f32 %v656_v11  ;;  %v678_v22 = vmul.f32 0.5, %v469_v18  ;;  %v471_v23 = vpop.f32.mrb[9].mxu1  ;;  %v2338_v28 = vadd.f32 0.5, %v741_v10 }
 0x11d   :  { %v2071_v55 = vpop.eup %2070  ;;  %v2336_v24 = vadd.f32 0.5, %v716_v15  ;;  %v724_v25 = vmul.f32 0.5, %v2069_v19  ;;  %2090 = vtanh.f32 %v657_v17  ;;  %v546_v26 = vpop.f32.mrb[8].mxu0  ;;  %v679_v56 = vmul.f32 0.5, %v471_v23 }
 0x11e   :  { %v2073_v27 = vpop.eup %2072  ;;  %v718_v29 = vmul.f32 0.5, %v2071_v55  ;;  %2092 = vtanh.f32 %v678_v22  ;;  %v664_v30 = vmul.f32 0.5, %v546_v26  ;;  %v548_v31 = vpop.f32.mrb[9].mxu0  ;;  %v2342_v38 = vadd.f32 0.5, %v717_v21 }
 0x11f   :  { %v2075_v32 = vpop.eup %2074  ;;  %v2340_v33 = vadd.f32 0.5, %v724_v25  ;;  %v725_v34 = vmul.f32 0.5, %v2073_v27  ;;  %2094 = vtanh.f32 %v679_v56  ;;  %v665_v35 = vmul.f32 0.5, %v548_v31  ;;  %v629_v36 = vpop.f32.mrb[10].mxu1 }
 0x120   :  { %v2077_v37 = vpop.eup %2076  ;;  %v2344_v39 = vadd.f32 0.5, %v718_v29  ;;  %2096 = vtanh.f32 %v664_v30  ;;  %v658_v40 = vmul.f32 0.5, %v629_v36  ;;  %v631_v41 = vpop.f32.mrb[11].mxu1  ;;  %v719_v44 = vmul.f32 0.5, %v2075_v32 }
 0x121   :  { %v2079_v42 = vpop.eup %2078  ;;  %v1972_v43 = vpack.c.bf16 %v2340_v33, %v2336_v24  ;;  %v732_v45 = vmul.f32 0.5, %v2077_v37  ;;  %2098 = vtanh.f32 %v665_v35  ;;  %v552_v46 = vpop.f32.mrb[10].mxu0  ;;  %v757_v49 = vadd.f32 0.5, %v725_v34 }
 0x122   :  { %v2081_v47 = vpop.eup %2080  ;;  %v726_v7 = vmul.f32 0.5, %v2079_v42  ;;  %2100 = vtanh.f32 %v658_v40  ;;  %v659_v8 = vmul.f32 0.5, %v631_v41  ;;  %v554_v50 = vpop.f32.mrb[11].mxu0  ;;  %v672_v59 = vmul.f32 0.5, %v552_v46 }
 0x123   :  { %v2083_v51 = vpop.eup %2082  ;;  %v2348_v52 = vadd.f32 0.5, %v732_v45  ;;  %v733_v57 = vmul.f32 0.5, %v2081_v47  ;;  %v673_v61 = vmul.f32 0.5, %v554_v50  ;;  %v635_v63 = vpop.f32.mrb[12].mxu1  ;;  %v2352_v15 = vadd.f32 0.5, %v719_v44 }
 0x124   :  { %v2085_v3 = vpop.eup %2084  ;;  %v2350_v9 = vadd.f32 0.5, %v726_v7  ;;  %v727_v10 = vmul.f32 0.5, %v2083_v51  ;;  %2102 = vtanh.f32 %v659_v8  ;;  %v666_v11 = vmul.f32 0.5, %v635_v63  ;;  %v637_v12 = vpop.f32.mrb[13].mxu1 }
 0x125   :  { %v2087_v14 = vpop.eup %2086  ;;  %v1976_v17 = vpack.c.bf16 %v2334_v20, %v2348_v52  ;;  %v734_v18 = vmul.f32 0.5, %v2085_v3  ;;  %2104 = vtanh.f32 %v672_v59  ;;  %v558_v19 = vpop.f32.mrb[12].mxu0  ;;  %v765_v23 = vadd.f32 0.5, %v733_v57 }
 0x126   :  { %v2089_v21 = vpop.eup %2088  ;;  %v1980_v22 = vpack.c.bf16 %v2350_v9, %v2344_v39  ;;  %v759_v55 = vadd.f32 0.5, %v727_v10  ;;  %2106 = vtanh.f32 %v673_v61  ;;  %v560_v25 = vpop.f32.mrb[13].mxu0  ;;  %v735_v56 = vmul.f32 0.5, %v2087_v14  ;;  %v781_v39 = vld [vmem:[%s2921_s2 + $0x8] sm:$0x3f] }
 0x127   :  { %v2091_v26 = vpop.eup %2090  ;;  %v720_v27 = vmul.f32 0.5, %v2089_v21  ;;  %v680_v29 = vmul.f32 0.5, %v558_v19  ;;  %2108 = vtanh.f32 %v666_v11  ;;  %v641_v30 = vpop.f32.mrb[14].mxu1  ;;  %v2358_v32 = vadd.f32 0.5, %v734_v18 }
 0x128   :  { %v2093_v31 = vpop.eup %2092  ;;  %v721_v20 = vmul.f32 0.5, %v2091_v26  ;;  %v681_v34 = vmul.f32 0.5, %v560_v25  ;;  %v667_v35 = vmul.f32 0.5, %v637_v12  ;;  %v643_v36 = vpop.f32.mrb[15].mxu1  ;;  %v1970_v42 = vpack.c.bf16 %v757_v49, %v2342_v38 }
 0x129   :  { %v2095_v37 = vpop.eup %2094  ;;  %v752_v40 = vadd.f32 0.5, %v720_v27  ;;  %v742_v41 = vmul.f32 0.5, %v2093_v31  ;;  %2110 = vtanh.f32 %v680_v29  ;;  %v674_v47 = vmul.f32 0.5, %v641_v30 }
 0x12a   :  { %v2097_v44 = vpop.eup %2096  ;;  %v753_v45 = vadd.f32 0.5, %v721_v20  ;;  %v743_v46 = vmul.f32 0.5, %v2095_v37  ;;  %2112 = vtanh.f32 %v681_v34  ;;  %1971 = vmatprep.subr.bf16.mxu0 %v1970_v42  ;;  %v675_v51 = vmul.f32 0.5, %v643_v36 }
 0x12b   :  { %v2099_v7 = vpop.eup %2098  ;;  %v774_v8 = vadd.f32 0.5, %v742_v41  ;;  %v728_v50 = vmul.f32 0.5, %v2097_v44  ;;  %2114 = vtanh.f32 %v667_v35  ;;  %v647_v52 = vpop.f32.mrb[16].mxu1  ;;  %1973 = vmatpush1.bf16.msra.mxu0 %v1972_v43  ;;  %v1974_v38 = vpack.c.bf16 %v2338_v28, %v765_v23  ;;  %v2370_v28 = vld [vmem:[%s2921_s2] sm:$0xff] }
 0x12c   :  { %v2101_v57 = vpop.eup %2100  ;;  %v775_v59 = vadd.f32 0.5, %v743_v46  ;;  %v729_v61 = vmul.f32 0.5, %v2099_v7  ;;  %2116 = vtanh.f32 %v674_v47  ;;  %v649_v49 = vpop.f32.mrb[17].mxu1  ;;  %v767_v63 = vadd.f32 0.5, %v735_v56 }
 0x12d   :  { %v1984_v3 = vpack.c.bf16 %v774_v8, %v2358_v32  ;;  %v760_v10 = vadd.f32 0.5, %v728_v50  ;;  %2118 = vtanh.f32 %v675_v51  ;;  %1975 = vmatprep.subr.bf16.mxu0 %v1974_v38  ;;  %v1978_v14 = vpack.c.bf16 %v759_v55, %v2352_v15 }
 0x12e   :  { %v2103_v11 = vpop.eup %2102  ;;  %v761_v12 = vadd.f32 0.5, %v729_v61  ;;  %v682_v18 = vmul.f32 0.5, %v647_v52  ;;  %v683_v19 = vmul.f32 0.5, %v649_v49  ;;  %v722_v24 = vmul.f32 0.5, %v2101_v57 }
 0x12f   :  { %v2105_v21 = vpop.eup %2104  ;;  %v1988_v25 = vpack.c.bf16 %v760_v10, %v752_v40  ;;  %v1982_v33 = vpack.c.bf16 %v775_v59, %v767_v63  ;;  %1979 = vmatprep.subr.bf16.mxu1 %v1978_v14  ;;  %1977 = vmatpush1.bf16.msra.mxu0 %v1976_v17  ;;  %v723_v30 = vmul.f32 0.5, %v2103_v11  ;;  %v117_v11 = vrot.slane %v2233_v60, %v2237_v62 }
 0x130   :  { %v2107_v43 = vpop.eup %2106  ;;  %v736_v26 = vmul.f32 0.5, %v2105_v21  ;;  %2120 = vtanh.f32 %v682_v18  ;;  %v1986_v23 = vpack.c.bf16 %v761_v12, %v753_v45  ;;  %1981 = vmatpush1.bf16.msra.mxu1 %v1980_v22  ;;  %v754_v17 = vadd.f32 0.5, %v722_v24  ;;  %v1789_v18 = vld [vmem:[%s2922_s3] sm:$0xff] }
 0x131   :  { %v2109_v56 = vpop.eup %2108  ;;  %v737_v15 = vmul.f32 0.5, %v2107_v43  ;;  %2122 = vtanh.f32 %v683_v19  ;;  %1983 = vmatprep.subr.bf16.mxu1 %v1982_v33  ;;  %v755_v44 = vadd.f32 0.5, %v723_v30  ;;  %v2399_v12 = vmul.f32 %v117_v11, %v2193_v1 }
 0x132   :  { %v730_v55 = vmul.f32 0.5, %v2109_v56  ;;  %1987 = vmatprep.subr.bf16.mxu0 %v1986_v23  ;;  %1926 = vmatmul.mubr.msk.f32.vlgmr.msra.gmra.mrb[14].mxu0 %vm782_vm1, %v2370_v28  ;;  %v768_v31 = vadd.f32 0.5, %v736_v26  ;;  %v121_v21 = vrot.slane %v2230_v58, %v2237_v62  ;;  %v125_v1 = vrot.slane %v2243_v5, %v2237_v62 }
 0x133   :  { %v2111_v27 = vpop.eup %2110  ;;  %859 = vmatprep.mubr.f32.mxu0 %v2156_v4  ;;  %1989 = vmatpush1.bf16.msra.mxu0 %v1988_v25  ;;  %v769_v22 = vadd.f32 0.5, %v737_v15  ;;  %v1314_v14 = vmul.f32 %v2399_v12, %v2399_v12  ;;  %v1250_v26 = vmul.f32 3.8729835, %v2399_v12  ;;  %v2502_v11 = vmul.f32 1.7320508, %v2399_v12 }
 0x134   :  { %v2113_v29 = vpop.eup %2112  ;;  %v744_v32 = vmul.f32 0.5, %v2111_v27  ;;  %v762_v20 = vadd.f32 0.5, %v730_v55  ;;  %1985 = vmatpush1.bf16.msra.mxu1 %v1984_v3  ;;  %v2410_v25 = vmul.f32 %v121_v21, %v2188_v0  ;;  %v2419_v33 = vmul.f32 %v125_v1, %v2207_v6  ;;  %v2435_v55 = vld [vmem:[%s2919_s0 + $0x18] sm:$0xff] }
 0x135   :  { %v2115_v9 = vpop.eup %2114  ;;  %v745_v34 = vmul.f32 0.5, %v2113_v29  ;;  %v1330_v19 = vrot.slane %v1314_v14, 2  ;;  %v129_v0 = vrot.slane %v2240_v2, %v2237_v62  ;;  %v1266_v6 = vrot.slane %v2399_v12, 2 }
 0x136   :  { %v2117_v35 = vpop.eup %2116  ;;  %v776_v36 = vadd.f32 0.5, %v744_v32  ;;  %v1996_v37 = vpack.c.bf16 %v762_v20, %v754_v17  ;;  %v731_v40 = vmul.f32 0.5, %v2115_v9  ;;  %1927 = vmatmul.mubr.msk.f32.gmra.mrb[16].mxu0 %vm782_vm1, %v781_v39  ;;  %v2416_v24 = vmul.f32 %v2410_v25, %v2410_v25 }
 0x137   :  { %v2119_v41 = vpop.eup %2118  ;;  %v777_v42 = vadd.f32 0.5, %v745_v34  ;;  %1928 = vmatmul.mubr.msk.f32.vlgmr.msra.gmra.mrb[18].mxu1 %vm782_vm1, %v2370_v28  ;;  %1007 = vmatprep.mubr.f32.mxu0 %v2156_v4  ;;  %v738_v47 = vmul.f32 0.5, %v2117_v35  ;;  %v2428_v5 = vmul.f32 %v2419_v33, %v2419_v33  ;;  %v2438_v27 = vmul.f32 %v2435_v55, %v129_v0 }
 0x138   :  { %v1992_v45 = vpack.c.bf16 %v776_v36, %v768_v31  ;;  %v763_v46 = vadd.f32 0.5, %v731_v40  ;;  %936 = vmatprep.mubr.f32.mxu1 %v2156_v4  ;;  %v739_v50 = vmul.f32 0.5, %v2119_v41  ;;  %v1331_v58 = vrot.slane %v2416_v24, 2 }
 0x139   :  { %v1990_v7 = vpack.c.bf16 %v777_v42, %v769_v22  ;;  %v770_v61 = vadd.f32 0.5, %v738_v47  ;;  %v1402_v17 = vrot.slane %v1314_v14, 6  ;;  %v1332_v2 = vrot.slane %v2428_v5, 2 }
 0x13a   :  { %v2121_v8 = vpop.eup %2120  ;;  %v1994_v51 = vpack.c.bf16 %v763_v46, %v755_v44  ;;  %v771_v49 = vadd.f32 0.5, %v739_v50  ;;  %v1347_v56 = vadd.f32 %v1331_v58, %v2416_v24  ;;  %v1282_v31 = vmul.f32 %v1266_v6, %v1250_v26 }
 0x13b   :  { %v2123_v52 = vpop.eup %2122  ;;  %v746_v57 = vmul.f32 0.5, %v2121_v8  ;;  %1991 = vmatprep.subr.bf16.mxu0 %v1990_v7  ;;  %1929 = vmatmul.mubr.msk.f32.gmra.mrb[20].mxu1 %vm782_vm1, %v781_v39  ;;  %v2442_v20 = vsub.s32 3, %v2223_v53  ;;  %v2449_v9 = vsub.s32 4, %v2223_v53  ;;  %v1418_v22 = vsub.f32 %v1314_v14, %v1402_v17 }
 0x13c   :  { %v747_v59 = vmul.f32 0.5, %v2123_v52  ;;  %1995 = vmatprep.subr.bf16.mxu1 %v1994_v51  ;;  %1993 = vmatpush1.bf16.msra.mxu0 %v1992_v45  ;;  %v1355_v30 = vmul.f32 0.5, %v1347_v56  ;;  %v1348_v34 = vadd.f32 %v1332_v2, %v2428_v5  ;;  %v1251_v41 = vmul.f32 3.8729835, %v2410_v25  ;;  %v2466_v51 = vld [vmem:[%s2919_s0 + $0x20] sm:$0xff]  ;;  %v2534_v2 = vld [vmem:[%s2919_s0 + $0x10] sm:$0xff] }
 0x13d   :  { %v778_v38 = vadd.f32 0.5, %v746_v57  ;;  %1997 = vmatpush1.bf16.msra.mxu1 %v1996_v37  ;;  %1084 = vmatprep.mubr.f32.mxu1 %v2156_v4  ;;  %v133_v37 = vrot.slane %v2270_v48, %v2237_v62  ;;  %v1291_v42 = vrot.slane %v2410_v25, 1  ;;  %v137_v44 = vrot.slane %v2252_v13, %v2237_v62  ;;  %v2474_v13 = vld [vmem:[%s2919_s0] sm:$0xff] }
 0x13e   :  { %v779_v63 = vadd.f32 0.5, %v747_v59  ;;  %v1371_v36 = vrot.slane %v1355_v30, 7  ;;  %v1426_v46 = vmul.f32 1.9364917, %v1418_v22  ;;  %v1267_v7 = vrot.slane %v2410_v25, 2 }
 0x13f   :  { %v2000_v3 = vpack.c.bf16 %v778_v38, %v770_v61  ;;  %1930 = vmatmul.mubr.msk.f32.vlgmr.msra.gmra.mrb[18].mxu0 %vm782_vm1, %v2370_v28  ;;  %v1356_v50 = vmul.f32 0.5, %v1348_v34  ;;  %v2469_v52 = vmul.f32 %v2466_v51, %v133_v37  ;;  %v2480_v59 = vrot.slane %v2474_v13, %v2449_v9  ;;  %v2485_v38 = vld [vmem:[%s2919_s0 + $0x28] sm:$0xff] }
 0x140   :  { %v1998_v10 = vpack.c.bf16 %v779_v63, %v771_v49  ;;  %1013 = vmatprep.mubr.f32.mxu0 %v2156_v4  ;;  %v1387_v48 = vsub.f32 %v2416_v24, %v1371_v36  ;;  %v1307_v61 = vmul.f32 %v1291_v42, %v1251_v41  ;;  %v2488_v49 = vmul.f32 %v2485_v38, %v137_v44  ;;  %v2493_v63 = vld [vmem:[%s2919_s0 + $0x8] sm:$0xff] }
 0x141   :  { %v1283_v21 = vmul.f32 %v1267_v7, %v1251_v41  ;;  %v1372_v1 = vrot.slane %v1356_v50, 7  ;;  %v2518_v0 = vsub.s32 5, %v2223_v53  ;;  %v1404_v6 = vrot.slane %v2428_v5, 6 }
 0x142   :  { %1999 = vmatprep.subr.bf16.mxu1 %v1998_v10  ;;  %v2499_v10 = vrot.slane %v2493_v63, %v2449_v9  ;;  %v1443_v58 = vrot.slane %v1307_v61, 7  ;;  %v2529_v17 = vmul.f32 1.7320508, %v2410_v25  ;;  %v1268_v22 = vrot.slane %v2419_v33, 2 }
 0x143   :  { %2001 = vmatpush1.bf16.msra.mxu1 %v2000_v3  ;;  %1931 = vmatmul.mubr.msk.f32.gmra.mrb[20].mxu0 %vm782_vm1, %v781_v39  ;;  %v1388_v30 = vsub.f32 %v2428_v5, %v1372_v1  ;;  %v1483_v37 = vrot.slane %v1307_v61, 6  ;;  %v1420_v41 = vsub.f32 %v2428_v5, %v1404_v6  ;;  %v2552_v42 = vrot.slane %v2435_v55, %v2449_v9 }
 0x144   :  { %1948 = vmatprep.mubr.msk.f32.mxu0 %vm283_vm0, %v1789_v18  ;;  %v1506_v18 = vrot.slane %v1426_v46, 6  ;;  %v1523_v25 = vsel %vm1201_vm2, %v1283_v21, %v1443_v58  ;;  %v1253_v44 = vmul.f32 3.8729835, %v2438_v27  ;;  %v141_v46 = vrot.slane %v2272_v54, %v2237_v62  ;;  %v2574_v58 = vld [vmem:[%s2919_s0 + $0x30] sm:$0xff] }
 0x145   :  { %v1396_v7 = vmul.f32 2.236068, %v1388_v30  ;;  %v1428_v21 = vmul.f32 1.9364917, %v1420_v41  ;;  %v1269_v54 = vrot.slane %v2438_v27, 2  ;;  %v2587_v30 = vld [vmem:[%s2919_s0 + $0x38] sm:$0xff] }
 0x146   :  { %1932 = vmatmul.mubr.msk.f32.vlgmr.msra.gmra.mrb[22].mxu1 %vm782_vm1, %v2370_v28  ;;  %v1290_v28 = vrot.slane %v2399_v12, 1  ;;  %v1292_v12 = vrot.slane %v2419_v33, 1 }
 0x147   :  { %1090 = vmatprep.mubr.f32.mxu1 %v2156_v4  ;;  %v1346_v4 = vadd.f32 %v1330_v19, %v1314_v14 }
 0x148   :  { %v1306_v15 = vmul.f32 %v1290_v28, %v1250_v26  ;;  %v1252_v26 = vmul.f32 3.8729835, %v2419_v33  ;;  %v2515_v28 = vmul.f32 %v2488_v49, %v2488_v49 }
 0x149   :  { %v1354_v60 = vmul.f32 0.5, %v1346_v4  ;;  %v1395_v4 = vmul.f32 2.236068, %v1387_v48 }
 0x14a   :  { %1933 = vmatmul.mubr.msk.f32.gmra.mrb[24].mxu1 %vm782_vm1, %v781_v39  ;;  %v1442_v32 = vrot.slane %v1306_v15, 7  ;;  %v2446_v39 = vmul.f32 %v2438_v27, %v2438_v27  ;;  %v1482_v47 = vrot.slane %v1306_v15, 6  ;;  %v1308_v34 = vmul.f32 %v1292_v12, %v1252_v26 }
 0x14b   :  { %v1370_v43 = vrot.slane %v1354_v60, 7  ;;  %v1284_v50 = vmul.f32 %v1268_v22, %v1252_v26 }
 0x14c   :  { %v1522_v40 = vsel %vm1201_vm2, %v1282_v31, %v1442_v32  ;;  %v1333_v45 = vrot.slane %v2446_v39, 2  ;;  %v1444_v61 = vrot.slane %v1308_v34, 7 }
 0x14d   :  { %v1386_v23 = vsub.f32 %v1314_v14, %v1370_v43  ;;  %v1403_v14 = vrot.slane %v2416_v24, 6  ;;  %v2509_v43 = vmul.f32 %v2469_v52, %v2469_v52 }
 0x14e   :  { %v1349_v60 = vadd.f32 %v1333_v45, %v2446_v39  ;;  %v1293_v45 = vrot.slane %v2438_v27, 1  ;;  %v1524_v6 = vsel %vm1201_vm2, %v1284_v50, %v1444_v61  ;;  %v2619_v50 = vrot.slane %v2485_v38, %v2449_v9 }
 0x14f   :  { %v1394_v29 = vmul.f32 2.236068, %v1386_v23  ;;  %v2521_v23 = vsub.s32 6, %v2223_v53  ;;  %v1419_v56 = vsub.f32 %v2416_v24, %v1403_v14  ;;  %v2540_v53 = vrot.slane %v2534_v2, %v2449_v9 }
 0x150   :  { %v1467_v24 = vrot.slane %v1395_v4, 7  ;;  %v1357_v31 = vmul.f32 0.5, %v1349_v60  ;;  %v1334_v32 = vrot.slane %v2509_v43, 2  ;;  %v145_v14 = vrot.slane %v2255_v16, %v2237_v62 }
 0x151   :  { %v1466_v35 = vrot.slane %v1394_v29, 7  ;;  %v1427_v36 = vmul.f32 1.9364917, %v1419_v56  ;;  %v2568_v1 = vmul.f32 %v1293_v45, %v1253_v44  ;;  %v1405_v60 = vrot.slane %v2446_v39, 6 }
 0x152   :  { %v1350_v48 = vadd.f32 %v1334_v32, %v2509_v43  ;;  %v2577_v62 = vmul.f32 %v2574_v58, %v141_v46  ;;  %v1468_v16 = vrot.slane %v1396_v7, 7  ;;  %v1484_v56 = vrot.slane %v1308_v34, 6 }
 0x153   :  { %v1531_v8 = vsel %vm1530_vm3, %v1522_v40, %v1466_v35  ;;  %v1335_v35 = vrot.slane %v2515_v28, 2  ;;  %v1421_v34 = vsub.f32 %v2446_v39, %v1405_v60  ;;  %v1255_v61 = vmul.f32 3.8729835, %v2488_v49 }
 0x154   :  { %v1540_v19 = vsel %vm1539_vm4, %v1531_v8, %v1482_v47  ;;  %v1532_v47 = vsel %vm1530_vm3, %v1523_v25, %v1467_v24  ;;  %v1373_v8 = vrot.slane %v1357_v31, 7  ;;  %v1358_v12 = vmul.f32 0.5, %v1350_v48 }
 0x155   :  { %v2526_v15 = vsel %vm1548_vm5, %v1540_v19, %v1506_v18  ;;  %v1351_v5 = vadd.f32 %v1335_v35, %v2515_v28  ;;  %v1507_v18 = vrot.slane %v1427_v36, 6  ;;  %v2564_v19 = vmul.f32 1.7320508, %v2419_v33 }
 0x156   :  { %v1541_v4 = vsel %vm1539_vm4, %v1532_v47, %v1483_v37  ;;  %v2580_v33 = vmul.f32 1.7320508, %v2438_v27  ;;  %v1389_v26 = vsub.f32 %v2446_v39, %v1373_v8  ;;  %v2590_v31 = vmul.f32 %v2587_v30, %v145_v14 }
 0x157   :  { %v1359_v24 = vmul.f32 0.5, %v1351_v5  ;;  %v2593_v32 = vsel %vm1548_vm5, %v1541_v4, %v1507_v18  ;;  %v1508_v27 = vrot.slane %v1428_v21, 6  ;;  %v1285_v25 = vmul.f32 %v1269_v54, %v1253_v44 }
 0x158   :  { %v1445_v35 = vrot.slane %v2568_v1, 7  ;;  %v2601_v36 = vrot.slane %v2466_v51, %v2449_v9  ;;  %v2605_v37 = vmul.f32 %v2577_v62, %v2577_v62  ;;  %v1533_v41 = vsel %vm1530_vm3, %v1524_v6, %v1468_v16 }
 0x159   :  { %v1397_v45 = vmul.f32 2.236068, %v1389_v26  ;;  %v1485_v44 = vrot.slane %v2568_v1, 6  ;;  %v1374_v46 = vrot.slane %v1358_v12, 7  ;;  %v1254_v47 = vmul.f32 3.8729835, %v2469_v52 }
 0x15a   :  { %v1294_v39 = vrot.slane %v2469_v52, 1  ;;  %v1375_v7 = vrot.slane %v1359_v24, 7  ;;  %v2613_v8 = vmul.f32 %v2590_v31, %v2590_v31  ;;  %v1295_v5 = vrot.slane %v2488_v49, 1 }
 0x15b   :  { %v1429_v14 = vmul.f32 1.9364917, %v1421_v34  ;;  %v1525_v18 = vsel %vm1201_vm2, %v1285_v25, %v1445_v35  ;;  %v1336_v54 = vrot.slane %v2605_v37, 2  ;;  %v1542_v4 = vsel %vm1539_vm4, %v1533_v41, %v1484_v56 }
 0x15c   :  { %v1469_v1 = vrot.slane %v1397_v45, 7  ;;  %v1270_v60 = vrot.slane %v2469_v52, 2  ;;  %v1390_v16 = vsub.f32 %v2509_v43, %v1374_v46  ;;  %v1310_v26 = vmul.f32 %v1294_v39, %v1254_v47 }
 0x15d   :  { %v1406_v12 = vrot.slane %v2509_v43, 6  ;;  %v1391_v6 = vsub.f32 %v2515_v28, %v1375_v7  ;;  %v1337_v24 = vrot.slane %v2613_v8, 2  ;;  %v1271_v25 = vrot.slane %v2488_v49, 2 }
 0x15e   :  { %v1311_v34 = vmul.f32 %v1295_v5, %v1255_v61  ;;  %v1407_v35 = vrot.slane %v2515_v28, 6  ;;  %v2637_v56 = vrot.slane %v2574_v58, %v2449_v9  ;;  %v2640_v41 = vsel %vm1548_vm5, %v1542_v4, %v1508_v27 }
 0x15f   :  { %v1509_v45 = vrot.slane %v1429_v14, 6  ;;  %v2643_v46 = vmul.f32 1.7320508, %v2469_v52  ;;  %v1352_v39 = vadd.f32 %v1336_v54, %v2605_v37  ;;  %v1534_v7 = vsel %vm1530_vm3, %v1525_v18, %v1469_v1 }
 0x160   :  { %v1286_v21 = vmul.f32 %v1270_v60, %v1254_v47  ;;  %v1398_v48 = vmul.f32 2.236068, %v1390_v16  ;;  %v2648_v5 = vmul.f32 1.7320508, %v2488_v49  ;;  %v1422_v22 = vsub.f32 %v2509_v43, %v1406_v12 }
 0x161   :  { %v1446_v40 = vrot.slane %v1310_v26, 7  ;;  %v1399_v29 = vmul.f32 2.236068, %v1391_v6  ;;  %v1353_v27 = vadd.f32 %v1337_v24, %v2613_v8  ;;  %v1287_v4 = vmul.f32 %v1271_v25, %v1255_v61 }
 0x162   :  { %2925 = vst [vmem:[#allocation5_spill] sm:$0xff] %v2648_v5  ;;  %v1423_v14 = vsub.f32 %v2515_v28, %v1407_v35  ;;  %v1447_v52 = vrot.slane %v1311_v34, 7  ;;  %v1543_v18 = vsel %vm1539_vm4, %v1534_v7, %v1485_v44  ;;  %v1256_v47 = vmul.f32 3.8729835, %v2577_v62 }
 0x163   :  { %v1296_v49 = vrot.slane %v2577_v62, 1  ;;  %v1360_v1 = vmul.f32 0.5, %v1352_v39  ;;  %v1470_v60 = vrot.slane %v1398_v48, 7  ;;  %v1486_v43 = vrot.slane %v1310_v26, 6 }
 0x164   :  { %v1257_v16 = vmul.f32 3.8729835, %v2590_v31  ;;  %v1297_v12 = vrot.slane %v2590_v31, 1  ;;  %v2660_v61 = vmul.f32 1.9364917, %v1422_v22  ;;  %v1526_v28 = vsel %vm1201_vm2, %v1286_v21, %v1446_v40 }
 0x165   :  { %v1471_v6 = vrot.slane %v1399_v29, 7  ;;  %v1361_v24 = vmul.f32 0.5, %v1353_v27  ;;  %v2664_v25 = vsel %vm1548_vm5, %v1543_v18, %v1509_v45  ;;  %v2666_v44 = vmul.f32 1.9364917, %v1423_v14 }
 0x166   :  { %v1527_v35 = vsel %vm1201_vm2, %v1287_v4, %v1447_v52  ;;  %v1272_v48 = vrot.slane %v2577_v62, 2  ;;  %v1487_v26 = vrot.slane %v1311_v34, 6  ;;  %v1273_v39 = vrot.slane %v2590_v31, 2 }
 0x167   :  { %v2671_v7 = vmul.f32 %v1296_v49, %v1256_v47  ;;  %v1376_v22 = vrot.slane %v1360_v1, 7  ;;  %v1535_v40 = vsel %vm1530_vm3, %v1526_v28, %v1470_v60  ;;  %v2674_v29 = vmul.f32 %v1297_v12, %v1257_v16 }
 0x168   :  { %v1408_v21 = vrot.slane %v2605_v37, 6  ;;  %v1409_v45 = vrot.slane %v2613_v8, 6  ;;  %v1536_v34 = vsel %vm1530_vm3, %v1527_v35, %v1471_v6  ;;  %v1377_v52 = vrot.slane %v1361_v24, 7 }
 0x169   :  { %v2685_v1 = vrot.slane %v2587_v30, %v2449_v9  ;;  %v1288_v60 = vmul.f32 %v1272_v48, %v1256_v47  ;;  %v2688_v12 = vsel %vm1539_vm4, %v1535_v40, %v1486_v43  ;;  %v1289_v28 = vmul.f32 %v1273_v39, %v1257_v16 }
 0x16a   :  { %v1392_v3 = vsub.f32 %v2605_v37, %v1376_v22  ;;  %v1448_v14 = vrot.slane %v2671_v7, 7  ;;  %v2693_v6 = vsel %vm1539_vm4, %v1536_v34, %v1487_v26  ;;  %v1424_v24 = vsub.f32 %v2605_v37, %v1408_v21 }
 0x16b   :  { %v1425_v35 = vsub.f32 %v2613_v8, %v1409_v45  ;;  %v1449_v49 = vrot.slane %v2674_v29, 7  ;;  %v1393_v16 = vsub.f32 %v2613_v8, %v1377_v52  ;;  %v1488_v39 = vrot.slane %v2671_v7, 6 }
 0x16c   :  { %v2926_v22 = vrot.slane %v2474_v13, %v2442_v20  ;;  %v1400_v34 = vmul.f32 2.236068, %v1392_v3  ;;  %v2711_v13 = vmul.f32 1.9364917, %v1424_v24  ;;  %v2928_v24 = vrot.slane %v2534_v2, %v2442_v20 }
 0x205   :  { %v855_v54 = vpop.f32.mrb[14].mxu0 }
 0x206   :  { %v1169_v27 = vmul.f32 %v2480_v59, %v855_v54  ;;  %v857_v4 = vpop.f32.mrb[15].mxu0  ;;  %v1129_v26 = vmul.f32 %v2926_v22, %v855_v54  ;;  %v2713_v54 = vmul.f32 1.9364917, %v1425_v35  ;;  %v1528_v22 = vsel %vm1201_vm2, %v1288_v60, %v1448_v14 }
 0x207   :  { %v1170_v18 = vmul.f32 %v2499_v10, %v857_v4 }
 0x208   :  { %v1202_v5 = vrot.slane %v1169_v27, 7  ;;  %v2927_v27 = vrot.slane %v2493_v63, %v2442_v20  ;;  %v1529_v63 = vsel %vm1201_vm2, %v1289_v28, %v1449_v49 }
 0x209   :  { %v861_v57 = vpop.f32.mrb[16].mxu0  ;;  %v1205_v40 = vrot.slane %v1170_v18, 7 }
 0x20a   :  { %v1177_v47 = vmul.f32 %v2480_v59, %v861_v57  ;;  %v863_v43 = vpop.f32.mrb[17].mxu0  ;;  %v932_v48 = vpop.f32.mrb[18].mxu1  ;;  %v1130_v57 = vmul.f32 %v2927_v27, %v857_v4 }
 0x20b   :  { %v1178_v37 = vmul.f32 %v2499_v10, %v863_v43  ;;  %v1171_v21 = vmul.f32 %v2540_v53, %v932_v48  ;;  %v934_v45 = vpop.f32.mrb[19].mxu1  ;;  %v1401_v43 = vmul.f32 2.236068, %v1393_v16  ;;  %v1131_v35 = vmul.f32 %v2928_v24, %v932_v48 }
 0x20c   :  { %v1203_v59 = vrot.slane %v1177_v47, 7  ;;  %v1172_v52 = vmul.f32 %v2552_v42, %v934_v45 }
 0x20d   :  { %v1206_v7 = vrot.slane %v1178_v37, 7  ;;  %v1208_v47 = vrot.slane %v1171_v21, 7  ;;  %v1473_v21 = vrot.slane %v1401_v43, 7 }
 0x20e   :  { %v1204_v10 = vsel %vm1201_vm2, %v1202_v5, %v1203_v59  ;;  %v938_v18 = vpop.f32.mrb[20].mxu1  ;;  %v1472_v59 = vrot.slane %v1400_v34, 7  ;;  %v1211_v49 = vrot.slane %v1172_v52, 7 }
 0x20f   :  { %v1234_v4 = vadd.f32 %v1204_v10, %v1129_v26  ;;  %v1207_v3 = vsel %vm1201_vm2, %v1205_v40, %v1206_v7  ;;  %v1179_v37 = vmul.f32 %v2540_v53, %v938_v18  ;;  %v940_v27 = vpop.f32.mrb[21].mxu1 }
 0x210   :  { %v1235_v8 = vadd.f32 %v1207_v3, %v1130_v57  ;;  %v1180_v5 = vmul.f32 %v2552_v42, %v940_v27  ;;  %v2929_v42 = vrot.slane %v2435_v55, %v2442_v20  ;;  %v1537_v43 = vsel %vm1530_vm3, %v1528_v22, %v1472_v59 }
 0x211   :  { %v1560_v16 = vrot.slane %v1234_v4, %v2449_v9  ;;  %v1600_v14 = vrot.slane %v1234_v4, %v2518_v0  ;;  %v1209_v60 = vrot.slane %v1179_v37, 7  ;;  %v1640_v3 = vrot.slane %v1234_v4, %v2521_v23 }
 0x212   :  { %v1564_v28 = vrot.slane %v1235_v8, %v2449_v9  ;;  %v1604_v26 = vrot.slane %v1235_v8, %v2518_v0  ;;  %v1212_v53 = vrot.slane %v1180_v5, 7  ;;  %v1009_v40 = vpop.f32.mrb[18].mxu0  ;;  %v1132_v48 = vmul.f32 %v2929_v42, %v934_v45 }
 0x213   :  { %v1589_v57 = vmul.f32 %v1560_v16, %v2502_v11  ;;  %v2730_v2 = vmul.f32 %v1600_v14, %v2502_v11  ;;  %v1210_v34 = vsel %vm1201_vm2, %v1208_v47, %v1209_v60  ;;  %v1011_v7 = vpop.f32.mrb[19].mxu0  ;;  %v1512_v5 = vrot.slane %v2711_v13, 6 }
 0x214   :  { %v1590_v52 = vmul.f32 %v1564_v28, %v2529_v17  ;;  %v2738_v10 = vmul.f32 %v1604_v26, %v2529_v17  ;;  %v1236_v18 = vadd.f32 %v1210_v34, %v1131_v35  ;;  %v1213_v27 = vsel %vm1201_vm2, %v1211_v49, %v1212_v53 }
 0x215   :  { %v1685_v37 = vrot.slane %v1589_v57, 4  ;;  %v1709_v11 = vrot.slane %v2730_v2, 1  ;;  %v2749_v22 = vadd.f32 %v1213_v27, %v1132_v48  ;;  %v1546_v16 = vsel %vm1539_vm4, %v1537_v43, %v1488_v39 }
 0x216   :  { %v1686_v55 = vrot.slane %v1590_v52, 4  ;;  %v1710_v45 = vrot.slane %v2738_v10, 1  ;;  %v1568_v47 = vrot.slane %v1236_v18, %v2449_v9  ;;  %v1015_v24 = vpop.f32.mrb[20].mxu0  ;;  %v1608_v35 = vrot.slane %v1236_v18, %v2518_v0 }
 0x217   :  { %v1749_v17 = vsel %vm1548_vm5, %v1234_v4, %v1685_v37  ;;  %v1017_v59 = vpop.f32.mrb[21].mxu0  ;;  %v1644_v49 = vrot.slane %v1235_v8, %v2521_v23  ;;  %v2759_v4 = vmul.f32 %v1640_v3, %v2526_v15  ;;  %v1538_v57 = vsel %vm1530_vm3, %v1529_v63, %v1473_v21 }
 0x218   :  { %v1758_v14 = vsel %vm1757_vm6, %v1749_v17, %v1709_v11  ;;  %v1750_v60 = vsel %vm1548_vm5, %v1235_v8, %v1686_v55  ;;  %v1591_v28 = vmul.f32 %v1568_v47, %v2564_v19  ;;  %v2765_v39 = vmul.f32 %v1608_v35, %v2564_v19 }
 0x219   :  { %v1086_v13 = vpop.f32.mrb[22].mxu1  ;;  %v1759_v26 = vsel %vm1757_vm6, %v1750_v60, %v1710_v45  ;;  %v2769_v8 = vmul.f32 1.7320508, %v2577_v62  ;;  %v2772_v34 = vmul.f32 1.7320508, %v2590_v31  ;;  %v1572_v15 = vrot.slane %v2749_v22, %v2449_v9 }
 0x21a   :  { %v1088_v53 = vpop.f32.mrb[23].mxu1  ;;  %v1774_v42 = vadd.f32 %v1759_v26, %v1758_v14  ;;  %v1687_v48 = vrot.slane %v1591_v28, 4  ;;  %v1173_v52 = vmul.f32 %v2601_v36, %v1009_v40  ;;  %v2930_v43 = vrot.slane %v2660_v61, 6 }
 0x21b   :  { %v2931_v63 = vrot.slane %v2666_v44, 6  ;;  %v2790_v31 = vmul.f32 %v1644_v49, %v2593_v32  ;;  %v1513_v3 = vrot.slane %v2713_v54, 6  ;;  %v2932_v37 = vrot.slane %v2674_v29, 6 }
 0x21c   :  { %v2781_v19 = vsel %vm1548_vm5, %v2688_v12, %v2930_v43  ;;  %v2799_v12 = vsel %vm1548_vm5, %v1546_v16, %v1512_v5  ;;  %v1733_v44 = vrot.slane %v2759_v4, 6  ;;  %v1648_v27 = vrot.slane %v1236_v18, %v2521_v23 }
 0x21d   :  { %v2787_v62 = vsel %vm1548_vm5, %v2693_v6, %v2931_v63  ;;  %v1092_v21 = vpop.f32.mrb[24].mxu1  ;;  %v2796_v61 = vsel %vm1539_vm4, %v1538_v57, %v2932_v37  ;;  %v1711_v6 = vrot.slane %v2765_v39, 1  ;;  %v1174_v32 = vmul.f32 %v2619_v50, %v1011_v7 }
 0x21e   :  { %v1094_v55 = vpop.f32.mrb[25].mxu1  ;;  %v1751_v47 = vsel %vm1548_vm5, %v1236_v18, %v1687_v48  ;;  %v1214_v17 = vrot.slane %v1173_v52, 7  ;;  %v1181_v29 = vmul.f32 %v2601_v36, %v1015_v24  ;;  %v1182_v35 = vmul.f32 %v2619_v50, %v1017_v59 }
 0x21f   :  { %v1592_v14 = vmul.f32 %v1572_v15, %v2580_v33  ;;  %v1612_v5 = vrot.slane %v2749_v22, %v2518_v0  ;;  %v2933_v16 = vrot.slane %v2466_v51, %v2442_v20  ;;  %v1217_v60 = vrot.slane %v1174_v32, 7 }
 0x220   :  { %v1215_v28 = vrot.slane %v1181_v29, 7  ;;  %v1218_v26 = vrot.slane %v1182_v35, 7  ;;  %v1175_v57 = vmul.f32 %v2637_v56, %v1086_v13  ;;  %v1176_v18 = vmul.f32 %v2685_v1, %v1088_v53 }
 0x221   :  { %v1133_v49 = vmul.f32 %v2933_v16, %v1009_v40  ;;  %v1760_v36 = vsel %vm1757_vm6, %v1751_v47, %v1711_v6  ;;  %v2934_v50 = vrot.slane %v2485_v38, %v2442_v20  ;;  %v1183_v59 = vmul.f32 %v2637_v56, %v1092_v21 }
 0x222   :  { %v1184_v51 = vmul.f32 %v2685_v1, %v1094_v55  ;;  %v1671_v40 = vmul.f32 %v1648_v27, %v2640_v41  ;;  %v1652_v48 = vrot.slane %v2749_v22, %v2521_v23  ;;  %v1216_v15 = vsel %vm1201_vm2, %v1214_v17, %v1215_v28  ;;  %v2937_v28 = vld [vmem:[#allocation5_spill] sm:$0xff] }
 0x223   :  { %v1134_v24 = vmul.f32 %v2934_v50, %v1011_v7  ;;  %v1219_v52 = vsel %vm1201_vm2, %v1217_v60, %v1218_v26  ;;  %v1238_v43 = vadd.f32 %v1216_v15, %v1133_v49  ;;  %v1221_v37 = vrot.slane %v1183_v59, 7 }
 0x224   :  { %v1224_v32 = vrot.slane %v1184_v51, 7  ;;  %v1632_v38 = vmul.f32 %v1612_v5, %v2580_v33  ;;  %v1220_v7 = vrot.slane %v1175_v57, 7  ;;  %v1223_v47 = vrot.slane %v1176_v18, 7 }
 0x225   :  { %v1239_v63 = vadd.f32 %v1219_v52, %v1134_v24  ;;  %v1776_v56 = vadd.f32 %v1774_v42, %v1760_v36  ;;  %v1688_v21 = vrot.slane %v1592_v14, 4  ;;  %v1576_v1 = vrot.slane %v1238_v43, %v2449_v9 }
 0x226   :  { %v1616_v41 = vrot.slane %v1238_v43, %v2518_v0  ;;  %v2935_v55 = vrot.slane %v2574_v58, %v2442_v20  ;;  %v2936_v29 = vrot.slane %v2587_v30, %v2442_v20  ;;  %v1222_v33 = vsel %vm1201_vm2, %v1220_v7, %v1221_v37 }
 0x227   :  { %v1580_v27 = vrot.slane %v1239_v63, %v2449_v9  ;;  %v1225_v5 = vsel %vm1201_vm2, %v1223_v47, %v1224_v32  ;;  %v1734_v42 = vrot.slane %v2790_v31, 6  ;;  %v1672_v14 = vmul.f32 %v1652_v48, %v2664_v25 }
 0x228   :  { %v1135_v17 = vmul.f32 %v2935_v55, %v1086_v13  ;;  %v1136_v35 = vmul.f32 %v2936_v29, %v1088_v53  ;;  %v1593_v16 = vmul.f32 %v1576_v1, %v2643_v46  ;;  %v1620_v49 = vrot.slane %v1239_v63, %v2518_v0 }
 0x229   :  { %v1712_v60 = vrot.slane %v1632_v38, 1  ;;  %v1594_v58 = vmul.f32 %v1580_v27, %v2937_v28  ;;  %v1735_v57 = vrot.slane %v1671_v40, 6  ;;  %v1752_v20 = vsel %vm1548_vm5, %v2749_v22, %v1688_v21 }
 0x22a   :  { %v1240_v13 = vadd.f32 %v1222_v33, %v1135_v17  ;;  %v1241_v26 = vadd.f32 %v1225_v5, %v1136_v35  ;;  %v1633_v30 = vmul.f32 %v1616_v41, %v2643_v46  ;;  %v1656_v53 = vrot.slane %v1238_v43, %v2521_v23 }
 0x22b   :  { %v1689_v31 = vrot.slane %v1593_v16, 4  ;;  %v1736_v50 = vrot.slane %v1672_v14, 6  ;;  %v1660_v24 = vrot.slane %v1239_v63, %v2521_v23  ;;  %v1634_v51 = vmul.f32 %v1620_v49, %v2937_v28 }
 0x22c   :  { %v1584_v25 = vrot.slane %v1240_v13, %v2449_v9  ;;  %v1624_v18 = vrot.slane %v1240_v13, %v2518_v0  ;;  %v1588_v36 = vrot.slane %v1241_v26, %v2449_v9  ;;  %v1628_v59 = vrot.slane %v1241_v26, %v2518_v0 }
 0x22d   :  { %v1690_v40 = vrot.slane %v1594_v58, 4  ;;  %v1761_v48 = vsel %vm1757_vm6, %v1752_v20, %v1712_v60  ;;  %v1673_v15 = vmul.f32 %v1656_v53, %v2781_v19  ;;  %v1713_v52 = vrot.slane %v1633_v30, 1  ;;  %v1790_v20 = vld [vmem:[%s2922_s3 + $0x8] sm:$0xff]  ;;  %v1791_v30 = vld [vmem:[%s2922_s3 + $0x10] sm:$0xff]  ;;  %v1792_v53 = vld [vmem:[%s2922_s3 + $0x18] sm:$0x1] }
 0x22e   :  { %v1595_v22 = vmul.f32 %v1584_v25, %v2769_v8  ;;  %v1596_v46 = vmul.f32 %v1588_v36, %v2772_v34  ;;  %v1664_v37 = vrot.slane %v1240_v13, %v2521_v23  ;;  %v1635_v9 = vmul.f32 %v1624_v18, %v2769_v8 }
 0x22f   :  { %v1753_v32 = vsel %vm1548_vm5, %v1238_v43, %v1689_v31  ;;  %v1766_v0 = vsel %vm1530_vm3, %v1709_v11, %v1733_v44  ;;  %v1767_v7 = vsel %vm1530_vm3, %v1710_v45, %v1734_v42  ;;  %v1674_v19 = vmul.f32 %v1660_v24, %v2787_v62 }
 0x230   :  { %v1691_v38 = vrot.slane %v1595_v22, 4  ;;  %v1668_v47 = vrot.slane %v1241_v26, %v2521_v23  ;;  %v1636_v21 = vmul.f32 %v1628_v59, %v2772_v34  ;;  %v1714_v8 = vrot.slane %v1634_v51, 1 }
 0x231   :  { %v1556_v4 = vsel %vm1548_vm5, %v2796_v61, %v1513_v3  ;;  %v1692_v43 = vrot.slane %v1596_v46, 4  ;;  %v1754_v2 = vsel %vm1548_vm5, %v1239_v63, %v1690_v40  ;;  %v1768_v10 = vsel %vm1530_vm3, %v1711_v6, %v1735_v57 }
 0x232   :  { %v1737_v11 = vrot.slane %v1673_v15, 6  ;;  %v1675_v45 = vmul.f32 %v1664_v37, %v2799_v12  ;;  %v1715_v62 = vrot.slane %v1635_v9, 1  ;;  %v1762_v23 = vsel %vm1757_vm6, %v1753_v32, %v1713_v52 }
 0x233   :  { %v1755_v34 = vsel %vm1548_vm5, %v1240_v13, %v1691_v38  ;;  %v1769_v54 = vsel %vm1530_vm3, %v1712_v60, %v1736_v50  ;;  %v1775_v44 = vadd.f32 %v1767_v7, %v1766_v0  ;;  %v1778_v1 = vadd.f32 %v1776_v56, %v1761_v48 }
 0x234   :  { %v1676_v3 = vmul.f32 %v1668_v47, %v1556_v4  ;;  %v1716_v61 = vrot.slane %v1636_v21, 1  ;;  %v1738_v41 = vrot.slane %v1674_v19, 6  ;;  %v1763_v63 = vsel %vm1757_vm6, %v1754_v2, %v1714_v8 }
 0x235   :  { %v1756_v39 = vsel %vm1548_vm5, %v1241_v26, %v1692_v43  ;;  %v1777_v6 = vadd.f32 %v1775_v44, %v1768_v10  ;;  %v1780_v27 = vadd.f32 %v1778_v1, %v1762_v23  ;;  %v1739_v55 = vrot.slane %v1675_v45, 6 }
 0x236   :  { %v1764_v12 = vsel %vm1757_vm6, %v1755_v34, %v1715_v62  ;;  %v1770_v17 = vsel %vm1530_vm3, %v1713_v52, %v1737_v11  ;;  %v1740_v33 = vrot.slane %v1676_v3, 6  ;;  %v1765_v5 = vsel %vm1757_vm6, %v1756_v39, %v1716_v61 }
 0x237   :  { %v1779_v29 = vadd.f32 %v1777_v6, %v1769_v54  ;;  %v1782_v35 = vadd.f32 %v1780_v27, %v1763_v63  ;;  %v1771_v56 = vsel %vm1530_vm3, %v1714_v8, %v1738_v41  ;;  %v1772_v16 = vsel %vm1530_vm3, %v1715_v62, %v1739_v55 }
 0x238   :  { %v1773_v28 = vsel %vm1530_vm3, %v1716_v61, %v1740_v33 }
 0x239   :  { %v1781_v42 = vadd.f32 %v1779_v29, %v1770_v17  ;;  %v1784_v14 = vadd.f32 %v1782_v35, %v1764_v12 }
 0x23b   :  { %v1783_v49 = vadd.f32 %v1781_v42, %v1771_v56  ;;  %v1786_v60 = vadd.f32 %v1784_v14, %v1765_v5 }
 0x23d   :  { %v1785_v58 = vadd.f32 %v1783_v49, %v1772_v16 }
 0x23f   :  { %v1787_v13 = vadd.f32 %v1785_v58, %v1773_v28 }
 0x241   :  { %v1788_v26 = vsel %vm1757_vm6, %v1787_v13, 1.0 }
 0x242   :  { %v2002_v57 = vpack.c.bf16 %v1788_v26, %v1786_v60 }
 0x244   :  { %2003 = vmatprep.subr.bf16.mxu0 %v2002_v57 }
 0x245   :  { %2005 = vmatpush3.bf16.msra.mxu0 %v2002_v57 }
 0x248   :  { %1949 = vmatmul.mubr.msk.f32.vlgmr.msra.gmra.mrb[22].mxu0 %vm283_vm0, %v1790_v20 }
 0x249   :  { %1951 = vmatprep.mubr.msk.f32.mxu0 %vm283_vm0, %v1791_v30 }
 0x24c   :  { %1952 = vmatmul.mubr.msk.f32.gmra.mrb[24].mxu0 %vm283_vm0, %v1792_v53 }
 0x31b   :  { %v1950_v31 = vpop.f32.mrb[22].mxu0 }
 0x31c   :  { %1891 = vst [vmem:[#allocation2 + $0x8] sm:$0xff] %v1950_v31  ;;  %v1871_v25 = vpop.f32.mrb[23].mxu0 }
 0x31d   :  { %1890 = vst [vmem:[#allocation2] sm:$0xff] %v1871_v25 }
 0x31f   :  { %v1953_v18 = vpop.f32.mrb[24].mxu0 }
 0x320   :  { %1893 = vst [vmem:[#allocation2 + $0x18] sm:$0x1] %v1953_v18  ;;  %v1881_v36 = vpop.f32.mrb[25].mxu0 }
 0x321   :  { %1892 = vst [vmem:[#allocation2 + $0x10] sm:$0xff] %v1881_v36 }
 0x322   :  { %2143 = shalt.err (!%p2140_p4)
}
 0x323   :  { %s2144_s15 = scalar_lea.hbm %s2923_s4, 512 }
 0x324   :  { %p2145_p5 = scmp.ne.s32.totalorder %s2923_s4, %s2144_s15  ;;  %p2148_p6 = scmp.lt.u32.totalorder %s2144_s15, %s2923_s4 }
 0x326   :  { %p2150_p7 = pnand %p2148_p6, %p2145_p5 }
 0x328   :  { %2153 = shalt.err (!%p2150_p7)
}
 0x329   :  { %s2158_s19 = smov 128   ;;  %s2159_s20 = smov 8  }
 0x32a   :  { %1905 = dma.vmem_to_hbm [thread:$0]  %s1900_s1, 512, %s2923_s4, [#allocation3], %s2158_s19, %s2158_s19, %s2159_s20  }
 0x32b   :  { %2154 = dma.done.wait [#allocation3], 512  }
 0x32c   :  { %2155 = vsyncadd [#allocation3], 4294966784 }
 0x32d   :  { %1909 = vsyncpa [#allocation3], 1 }

</bundles_post_ra>
